<compile_context>
chip_gen: v7x
topology: tpu7x:2x2x1
jax: 0.10.0
libtpu: 0.0.40
codegen_flags: <defaults>
</compile_context>

<pallas_src>
import functools

import jax
import jax.numpy as jnp
from jax.experimental import pallas as pl
from jax.experimental.pallas import tpu as pltpu


# ----------------------------- in-kernel math helpers -----------------------------

def _gelu(x):
    # tanh-approximate GELU; tanh lowers to the EUP (its own VLIW slot).  Max abs
    # deviation from torch.nn.GELU()'s exact erf form is ~3e-4.
    c = 0.7978845608028654  # sqrt(2/pi)
    return 0.5 * x * (1.0 + jnp.tanh(c * (x + 0.044715 * x * x * x)))


def _layer_norm(x, gamma, beta, eps=1e-5):
    mu = jnp.mean(x, axis=-1, keepdims=True)
    var = jnp.mean((x - mu) * (x - mu), axis=-1, keepdims=True)
    return (x - mu) * jax.lax.rsqrt(var + eps) * gamma + beta


# ----------------------------------- kernel ---------------------------------------

def dec_layer_kernel(
    # row-tiled inputs
    hV_ref,      # [TM, H]        f32
    hE_ref,      # [TM, K*Cp]     bf16, lane-dense (Cp = C padded to 128)
    mk_ref,      # [TM, K+1]      f32: cols 0..K-1 = mask_attend, col K = mask_V
    # resident parameters (constant index_map across the grid)
    w1v_ref,     # [H, H]    node part of W1
    w1e_ref,     # [Cp, H]   edge part of W1
    w2_ref,      # [H, H]
    w3_ref,      # [H, H]
    win_ref,     # [H, 4H]
    wout_ref,    # [4H, H]
    vec_ref,     # [8, H]    rows: b1, b2, b3, b_out, gamma1, beta1, gamma2, beta2
    bin_ref,     # [1, 4H]
    # output
    out_ref,     # [TM, H]
    *, k_neighbors: int, scale: float,
):
    f32 = jnp.float32
    K = k_neighbors
    hV = hV_ref[...].astype(f32)                          # [TM, H]
    TM, H = hV.shape
    Cp = hE_ref.shape[1] // K

    vecs = vec_ref[...].astype(f32)                       # [8, H]
    b1, b2, b3, b_out = vecs[0:1], vecs[1:2], vecs[2:3], vecs[3:4]
    g1, be1, g2, be2 = vecs[4:5], vecs[5:6], vecs[6:7], vecs[7:8]
    b_in = bin_ref[...].astype(f32)                       # [1, 4H]

    w1v, w1e, w2, w3 = w1v_ref[...], w1e_ref[...], w2_ref[...], w3_ref[...]
    w_in, w_out = win_ref[...], wout_ref[...]
    mm = w2.dtype                                          # matmul operand dtype

    masks = mk_ref[...].astype(f32)                        # [TM, K+1]
    ma = masks[:, :K]                                      # [TM, K]
    mv = masks[:, K:K + 1]                                 # [TM, 1]

    # k-invariant part of W1(cat[h_V, h_E_k]):  h_V @ W1_v + b1   (computed once)
    t = jnp.dot(hV.astype(mm), w1v, preferred_element_type=f32) + b1   # [TM, H]

    # Batched per-neighbor messages: stack the K aligned lane slices along the row
    # axis (k-major) and run ONE matmul chain with M = K*TM.
    hE = hE_ref[...]                                       # [TM, K*Cp] bf16
    e_all = jnp.concatenate(
        [hE[:, k * Cp:(k + 1) * Cp] for k in range(K)], axis=0)        # [K*TM, Cp]

    h1 = jnp.dot(e_all, w1e, preferred_element_type=f32)               # [K*TM, H]
    h1 = _gelu(h1.reshape(K, TM, H) + t[None]).reshape(K * TM, H)      # free reshapes
    h2 = _gelu(jnp.dot(h1.astype(mm), w2, preferred_element_type=f32) + b2)
    h3 = jnp.dot(h2.astype(mm), w3, preferred_element_type=f32)        # b3 hoisted

    msg = h3.reshape(K, TM, H)
    acc = jnp.zeros((TM, H), f32)
    for k in range(K):                                     # K is small & static
        acc = acc + ma[:, k:k + 1] * msg[k]
    acc = acc + jnp.sum(ma, axis=1, keepdims=True) * b3    # hoisted bias term

    # residual + norm1 (dropout = identity in eval mode)
    x = _layer_norm(hV + acc * (1.0 / scale), g1, be1)

    # position-wise feed-forward
    ff = _gelu(jnp.dot(x.astype(mm), w_in, preferred_element_type=f32) + b_in)
    ff = jnp.dot(ff.astype(mm), w_out, preferred_element_type=f32) + b_out

    # residual + norm2 + node mask
    x = _layer_norm(x + ff, g2, be2)
    out_ref[...] = (x * mv).astype(out_ref.dtype)


# ---------------------------------- wrapper ----------------------------------------

def _round_up(x, m):
    return (x + m - 1) // m * m


def _vmem_estimate_bytes(tm, H, K, Cp):
    lane = lambda n: _round_up(max(n, 1), 128)
    f32b, bf16b = 4, 2
    blocks = (tm * lane(H) * f32b                # h_V
              + tm * lane(K * Cp) * bf16b        # h_E slab
              + tm * lane(K + 1) * f32b          # masks
              + tm * lane(H) * f32b)             # out
    weights = (bf16b * (3 * H * H + Cp * H + 2 * H * 4 * H)
               + f32b * (8 * lane(H) + lane(4 * H)))
    interm = (K * tm * lane(Cp) * bf16b          # stacked edge operand
              + 3 * K * tm * lane(H) * f32b      # h1 / h2 / h3
              + tm * lane(4 * H) * f32b          # FF hidden
              + 6 * tm * lane(H) * f32b)         # acc / x / ff / misc
    return 2 * blocks + 2 * weights + interm


def dec_layer_forward(h_V, h_E, mask_V, mask_attend, params, *,
                      scale=30.0, tm=512, matmul_dtype=jnp.bfloat16):
    """h_V: [B,L,H], h_E: [B,L,K,C], mask_V: [B,L], mask_attend: [B,L,K]."""
    B, L, H = h_V.shape
    K, C = h_E.shape[-2], h_E.shape[-1]
    N = B * L
    assert H % 128 == 0, "num_hidden must be a multiple of 128 for this kernel"
    Cp = _round_up(C, 128)                 # pad edge features so lane slices align

    # Row tile: clamp for small problems; keep >= 2 grid steps when N allows so the
    # 'parallel' axis can shard across v7x's two TensorCores.
    tm = max(8, min(tm, _round_up(N, 8)))
    if N >= 16 and _round_up(N, tm) // tm < 2:
        tm = _round_up((N + 1) // 2, 8)
    N_pad = _round_up(N, tm)               # padded rows have mask 0 and are sliced off

    hE = h_E
    if Cp != C:
        hE = jnp.pad(hE, ((0, 0), (0, 0), (0, 0), (0, Cp - C)))
    hV_f = h_V.reshape(N, H).astype(jnp.float32)
    hE_f = hE.reshape(N, K * Cp).astype(matmul_dtype)      # lane-dense edge slab
    mk_f = jnp.concatenate(
        [mask_attend.reshape(N, K), mask_V.reshape(N, 1)], axis=1
    ).astype(jnp.float32)                                  # [N, K+1] merged masks
    if N_pad != N:
        pad = N_pad - N
        hV_f = jnp.pad(hV_f, ((0, pad), (0, 0)))
        hE_f = jnp.pad(hE_f, ((0, pad), (0, 0)))
        mk_f = jnp.pad(mk_f, ((0, pad), (0, 0)))

    # W1 split: node part (k-invariant) and edge part (rows padded to Cp).
    w1_v = params["w1"][:H, :].astype(matmul_dtype)
    w1_e = params["w1"][H:, :]
    if Cp != C:
        w1_e = jnp.pad(w1_e, ((0, Cp - C), (0, 0)))
    w1_e = w1_e.astype(matmul_dtype)
    w2 = params["w2"].astype(matmul_dtype)
    w3 = params["w3"].astype(matmul_dtype)
    w_in = params["win"].astype(matmul_dtype)
    w_out = params["wout"].astype(matmul_dtype)
    vecs = jnp.concatenate(
        [params["b1"], params["b2"], params["b3"], params["bout"],
         params["norm1_g"], params["norm1_b"],
         params["norm2_g"], params["norm2_b"]], axis=0).astype(jnp.float32)
    b_in = params["bin"].astype(jnp.float32)

    # Resident parameters: full-array blocks, constant index_map.  (They could be
    # single-buffered with pipeline_mode=pl.Buffered(1); not needed at these sizes.)
    full = lambda a: pl.BlockSpec(a.shape, lambda i: (0,) * a.ndim)
    in_specs = [
        pl.BlockSpec((tm, H), lambda i: (i, 0)),
        pl.BlockSpec((tm, K * Cp), lambda i: (i, 0)),
        pl.BlockSpec((tm, K + 1), lambda i: (i, 0)),
        full(w1_v), full(w1_e), full(w2), full(w3), full(w_in), full(w_out),
        full(vecs), full(b_in),
    ]

    vmem_limit = int(min(128 << 20,
                         max(32 << 20, _vmem_estimate_bytes(tm, H, K, Cp) + (8 << 20))))

    out_flat = pl.pallas_call(
        functools.partial(dec_layer_kernel, k_neighbors=K, scale=float(scale)),
        out_shape=jax.ShapeDtypeStruct((N_pad, H), h_V.dtype),
        grid=(N_pad // tm,),
        in_specs=in_specs,
        out_specs=pl.BlockSpec((tm, H), lambda i: (i, 0)),
        compiler_params=pltpu.CompilerParams(
            dimension_semantics=("parallel",),
            vmem_limit_bytes=vmem_limit),
    )(hV_f, hE_f, mk_f, w1_v, w1_e, w2, w3, w_in, w_out, vecs, b_in)

    return out_flat[:N].reshape(B, L, H)


# ------------------------------ parameter creation ---------------------------------

def make_params(key, num_hidden, num_in):
    H, C = num_hidden, num_in
    ks = jax.random.split(key, 5)

    def lin(k, d_in, d_out):
        s = 1.0 / jnp.sqrt(d_in)
        kw, kb = jax.random.split(k)
        w = jax.random.uniform(kw, (d_in, d_out), jnp.float32, -s, s)
        b = jax.random.uniform(kb, (1, d_out), jnp.float32, -s, s)
        return w, b

    w1, b1 = lin(ks[0], H + C, H)
    w2, b2 = lin(ks[1], H, H)
    w3, b3 = lin(ks[2], H, H)
    win, bin_ = lin(ks[3], H, 4 * H)
    wout, bout = lin(ks[4], 4 * H, H)
    return dict(
        w1=w1, b1=b1, w2=w2, b2=b2, w3=w3, b3=b3,
        win=win, bin=bin_, wout=wout, bout=bout,
        norm1_g=jnp.ones((1, H), jnp.float32),
        norm1_b=jnp.zeros((1, H), jnp.float32),
        norm2_g=jnp.ones((1, H), jnp.float32),
        norm2_b=jnp.zeros((1, H), jnp.float32),
    )


# ------------------------------ pure-JAX reference ----------------------------------

def dec_layer_reference(h_V, h_E, mask_V, mask_attend, params, *, scale=30.0):
    gelu = lambda x: jax.nn.gelu(x, approximate=False)     # exact erf, f32
    H = h_V.shape[-1]
    hV_exp = jnp.broadcast_to(h_V[..., None, :], h_E.shape[:-1] + (H,))
    h_EV = jnp.concatenate([hV_exp, h_E], axis=-1)
    h = gelu(h_EV @ params["w1"] + params["b1"])
    h = gelu(h @ params["w2"] + params["b2"])
    h = h @ params["w3"] + params["b3"]
    h = mask_attend[..., None] * h
    dh = jnp.sum(h, axis=-2) / scale

    def ln(x, g, b):
        mu = jnp.mean(x, axis=-1, keepdims=True)
        var = jnp.mean((x - mu) ** 2, axis=-1, keepdims=True)
        return (x - mu) * jax.lax.rsqrt(var + 1e-5) * g + b

    hv = ln(h_V + dh, params["norm1_g"], params["norm1_b"])
    ff = gelu(hv @ params["win"] + params["bin"]) @ params["wout"] + params["bout"]
    hv = ln(hv + ff, params["norm2_g"], params["norm2_b"])
    return mask_V[..., None] * hv


# -------------------------------------- main ----------------------------------------

if __name__ == "__main__":
    B, L, K = 2, 8, 4          # batch, sequence length, neighbors
    H, C = 128, 384            # num_hidden, num_in (ProteinMPNN decoder: num_in = 3*H)

    key = jax.random.PRNGKey(0)
    k_hv, k_he, k_p = jax.random.split(key, 3)

    h_V = jax.random.normal(k_hv, (B, L, H), jnp.float32)
    h_E = jax.random.normal(k_he, (B, L, K, C), jnp.float32)
    mask_V = jnp.ones((B, L), jnp.float32)
    mask_attend = jnp.ones((B, L, K), jnp.float32)

    params = make_params(k_p, H, C)

    out = dec_layer_forward(h_V, h_E, mask_V, mask_attend, params, scale=30.0)
    jax.block_until_ready(out)
    assert out.shape == (B, L, H)

    # Sanity check vs a pure-JAX f32 / exact-GELU reference.  The kernel uses bf16
    # MXU operands and tanh-GELU, so tolerance reflects bf16 rounding (~1e-2 typical).
    ref = dec_layer_reference(h_V, h_E, mask_V, mask_attend, params, scale=30.0)
    err = float(jnp.max(jnp.abs(out - ref)))
    assert err < 3e-2, f"max abs error {err}"

    print("KERNEL_OK")
</pallas_src>

<mosaic_0001>
module attributes {stable_mosaic.version = 11 : i64} {
  func.func @dec_layer_kernel(%arg0: i32, %arg1: memref<8x128xf32, #tpu.memory_space<vmem>>, %arg2: memref<8x1536xbf16, #tpu.memory_space<vmem>>, %arg3: memref<8x5xf32, #tpu.memory_space<vmem>>, %arg4: memref<128x128xbf16, #tpu.memory_space<vmem>>, %arg5: memref<384x128xbf16, #tpu.memory_space<vmem>>, %arg6: memref<128x128xbf16, #tpu.memory_space<vmem>>, %arg7: memref<128x128xbf16, #tpu.memory_space<vmem>>, %arg8: memref<128x512xbf16, #tpu.memory_space<vmem>>, %arg9: memref<512x128xbf16, #tpu.memory_space<vmem>>, %arg10: memref<8x128xf32, #tpu.memory_space<vmem>>, %arg11: memref<1x512xf32, #tpu.memory_space<vmem>>, %arg12: memref<8x128xf32, #tpu.memory_space<vmem>>) attributes {dimension_semantics = [#tpu.dimension_semantics<parallel>], iteration_bounds = array<i64: 2>, scalar_prefetch = 0 : i64, scratch_operands = 0 : i64, tpu.core_type = #tpu.core_type<tc>, window_params = [{transform_indices = @transform_0, window_bounds = array<i64: 8, 128>}, {transform_indices = @transform_1, window_bounds = array<i64: 8, 1536>}, {transform_indices = @transform_2, window_bounds = array<i64: 8, 5>}, {pipeline_mode = #tpu.pipeline_mode<synchronous>, transform_indices = @transform_3, window_bounds = array<i64: 128, 128>}, {pipeline_mode = #tpu.pipeline_mode<synchronous>, transform_indices = @transform_4, window_bounds = array<i64: 384, 128>}, {pipeline_mode = #tpu.pipeline_mode<synchronous>, transform_indices = @transform_5, window_bounds = array<i64: 128, 128>}, {pipeline_mode = #tpu.pipeline_mode<synchronous>, transform_indices = @transform_6, window_bounds = array<i64: 128, 128>}, {pipeline_mode = #tpu.pipeline_mode<synchronous>, transform_indices = @transform_7, window_bounds = array<i64: 128, 512>}, {pipeline_mode = #tpu.pipeline_mode<synchronous>, transform_indices = @transform_8, window_bounds = array<i64: 512, 128>}, {pipeline_mode = #tpu.pipeline_mode<synchronous>, transform_indices = @transform_9, window_bounds = array<i64: 8, 128>}, {pipeline_mode = #tpu.pipeline_mode<synchronous>, transform_indices = @transform_10, window_bounds = array<i64: 1, 512>}, {transform_indices = @transform_11, window_bounds = array<i64: 8, 128>}]} {
    %c0 = arith.constant 0 : index
    %c0_0 = arith.constant 0 : index
    %0 = vector.load %arg1[%c0, %c0_0] : memref<8x128xf32, #tpu.memory_space<vmem>>, vector<8x128xf32>
    %c0_1 = arith.constant 0 : index
    %c0_2 = arith.constant 0 : index
    %1 = vector.load %arg10[%c0_1, %c0_2] : memref<8x128xf32, #tpu.memory_space<vmem>>, vector<8x128xf32>
    %2 = vector.extract_strided_slice %1 {offsets = [0, 0], sizes = [1, 128], strides = [1, 1]} : vector<8x128xf32> to vector<1x128xf32>
    %3 = vector.extract_strided_slice %1 {offsets = [1, 0], sizes = [1, 128], strides = [1, 1]} : vector<8x128xf32> to vector<1x128xf32>
    %4 = vector.extract_strided_slice %1 {offsets = [2, 0], sizes = [1, 128], strides = [1, 1]} : vector<8x128xf32> to vector<1x128xf32>
    %5 = vector.extract_strided_slice %1 {offsets = [3, 0], sizes = [1, 128], strides = [1, 1]} : vector<8x128xf32> to vector<1x128xf32>
    %6 = vector.extract_strided_slice %1 {offsets = [4, 0], sizes = [1, 128], strides = [1, 1]} : vector<8x128xf32> to vector<1x128xf32>
    %7 = vector.extract_strided_slice %1 {offsets = [5, 0], sizes = [1, 128], strides = [1, 1]} : vector<8x128xf32> to vector<1x128xf32>
    %8 = vector.extract_strided_slice %1 {offsets = [6, 0], sizes = [1, 128], strides = [1, 1]} : vector<8x128xf32> to vector<1x128xf32>
    %9 = vector.extract_strided_slice %1 {offsets = [7, 0], sizes = [1, 128], strides = [1, 1]} : vector<8x128xf32> to vector<1x128xf32>
    %c0_3 = arith.constant 0 : index
    %c0_4 = arith.constant 0 : index
    %10 = vector.load %arg11[%c0_3, %c0_4] : memref<1x512xf32, #tpu.memory_space<vmem>>, vector<1x512xf32>
    %c0_5 = arith.constant 0 : index
    %c0_6 = arith.constant 0 : index
    %11 = vector.load %arg4[%c0_5, %c0_6] : memref<128x128xbf16, #tpu.memory_space<vmem>>, vector<128x128xbf16>
    %c0_7 = arith.constant 0 : index
    %c0_8 = arith.constant 0 : index
    %12 = vector.load %arg5[%c0_7, %c0_8] : memref<384x128xbf16, #tpu.memory_space<vmem>>, vector<384x128xbf16>
    %c0_9 = arith.constant 0 : index
    %c0_10 = arith.constant 0 : index
    %13 = vector.load %arg6[%c0_9, %c0_10] : memref<128x128xbf16, #tpu.memory_space<vmem>>, vector<128x128xbf16>
    %c0_11 = arith.constant 0 : index
    %c0_12 = arith.constant 0 : index
    %14 = vector.load %arg7[%c0_11, %c0_12] : memref<128x128xbf16, #tpu.memory_space<vmem>>, vector<128x128xbf16>
    %c0_13 = arith.constant 0 : index
    %c0_14 = arith.constant 0 : index
    %15 = vector.load %arg8[%c0_13, %c0_14] : memref<128x512xbf16, #tpu.memory_space<vmem>>, vector<128x512xbf16>
    %c0_15 = arith.constant 0 : index
    %c0_16 = arith.constant 0 : index
    %16 = vector.load %arg9[%c0_15, %c0_16] : memref<512x128xbf16, #tpu.memory_space<vmem>>, vector<512x128xbf16>
    %c0_17 = arith.constant 0 : index
    %c0_18 = arith.constant 0 : index
    %17 = vector.load %arg3[%c0_17, %c0_18] : memref<8x5xf32, #tpu.memory_space<vmem>>, vector<8x5xf32>
    %18 = vector.extract_strided_slice %17 {offsets = [0, 0], sizes = [8, 4], strides = [1, 1]} : vector<8x5xf32> to vector<8x4xf32>
    %19 = vector.extract_strided_slice %17 {offsets = [0, 4], sizes = [8, 1], strides = [1, 1]} : vector<8x5xf32> to vector<8x1xf32>
    %20 = arith.truncf %0 : vector<8x128xf32> to vector<8x128xbf16>
    %cst = arith.constant dense<0.000000e+00> : vector<8x128xf32>
    %21 = tpu.matmul %20, %11, %cst {dimension_numbers = #tpu.dot_dimension_numbers<[1], [0], [0], [1], [0, 0, 1, 1], [], []>} : vector<8x128xbf16>, vector<128x128xbf16>, vector<8x128xf32> -> vector<8x128xf32>
    %22 = vector.broadcast %2 : vector<1x128xf32> to vector<8x128xf32>
    %23 = arith.addf %21, %22 : vector<8x128xf32>
    %c0_19 = arith.constant 0 : index
    %c0_20 = arith.constant 0 : index
    %24 = vector.load %arg2[%c0_19, %c0_20] : memref<8x1536xbf16, #tpu.memory_space<vmem>>, vector<8x1536xbf16>
    %25 = vector.extract_strided_slice %24 {offsets = [0, 0], sizes = [8, 384], strides = [1, 1]} : vector<8x1536xbf16> to vector<8x384xbf16>
    %26 = vector.extract_strided_slice %24 {offsets = [0, 384], sizes = [8, 384], strides = [1, 1]} : vector<8x1536xbf16> to vector<8x384xbf16>
    %27 = vector.extract_strided_slice %24 {offsets = [0, 768], sizes = [8, 384], strides = [1, 1]} : vector<8x1536xbf16> to vector<8x384xbf16>
    %28 = vector.extract_strided_slice %24 {offsets = [0, 1152], sizes = [8, 384], strides = [1, 1]} : vector<8x1536xbf16> to vector<8x384xbf16>
    %29 = tpu.concatenate %25, %26, %27, %28 in 0 : vector<8x384xbf16>, vector<8x384xbf16>, vector<8x384xbf16>, vector<8x384xbf16> -> vector<32x384xbf16>
    %cst_21 = arith.constant dense<0.000000e+00> : vector<32x128xf32>
    %30 = tpu.matmul %29, %12, %cst_21 {dimension_numbers = #tpu.dot_dimension_numbers<[1], [0], [0], [1], [0, 0, 1, 1], [], []>} : vector<32x384xbf16>, vector<384x128xbf16>, vector<32x128xf32> -> vector<32x128xf32>
    %31 = vector.shape_cast %30 : vector<32x128xf32> to vector<4x8x128xf32>
    %32 = vector.shape_cast %23 : vector<8x128xf32> to vector<1x8x128xf32>
    %33 = vector.broadcast %32 : vector<1x8x128xf32> to vector<4x8x128xf32>
    %34 = arith.addf %31, %33 : vector<4x8x128xf32>
    %cst_22 = arith.constant 5.000000e-01 : f32
    %35 = vector.broadcast %cst_22 : f32 to vector<4x8x128xf32>
    %36 = arith.mulf %35, %34 : vector<4x8x128xf32>
    %cst_23 = arith.constant 4.471500e-02 : f32
    %37 = vector.broadcast %cst_23 : f32 to vector<4x8x128xf32>
    %38 = arith.mulf %37, %34 : vector<4x8x128xf32>
    %39 = arith.mulf %38, %34 : vector<4x8x128xf32>
    %40 = arith.mulf %39, %34 : vector<4x8x128xf32>
    %41 = arith.addf %34, %40 : vector<4x8x128xf32>
    %cst_24 = arith.constant 0.797884583 : f32
    %42 = vector.broadcast %cst_24 : f32 to vector<4x8x128xf32>
    %43 = arith.mulf %42, %41 : vector<4x8x128xf32>
    %44 = math.tanh %43 : vector<4x8x128xf32>
    %cst_25 = arith.constant 1.000000e+00 : f32
    %45 = vector.broadcast %cst_25 : f32 to vector<4x8x128xf32>
    %46 = arith.addf %45, %44 : vector<4x8x128xf32>
    %47 = arith.mulf %36, %46 : vector<4x8x128xf32>
    %48 = vector.shape_cast %47 : vector<4x8x128xf32> to vector<32x128xf32>
    %49 = arith.truncf %48 : vector<32x128xf32> to vector<32x128xbf16>
    %cst_26 = arith.constant dense<0.000000e+00> : vector<32x128xf32>
    %50 = tpu.matmul %49, %13, %cst_26 {dimension_numbers = #tpu.dot_dimension_numbers<[1], [0], [0], [1], [0, 0, 1, 1], [], []>} : vector<32x128xbf16>, vector<128x128xbf16>, vector<32x128xf32> -> vector<32x128xf32>
    %51 = vector.broadcast %3 : vector<1x128xf32> to vector<32x128xf32>
    %52 = arith.addf %50, %51 : vector<32x128xf32>
    %cst_27 = arith.constant 5.000000e-01 : f32
    %53 = vector.broadcast %cst_27 : f32 to vector<32x128xf32>
    %54 = arith.mulf %53, %52 : vector<32x128xf32>
    %cst_28 = arith.constant 4.471500e-02 : f32
    %55 = vector.broadcast %cst_28 : f32 to vector<32x128xf32>
    %56 = arith.mulf %55, %52 : vector<32x128xf32>
    %57 = arith.mulf %56, %52 : vector<32x128xf32>
    %58 = arith.mulf %57, %52 : vector<32x128xf32>
    %59 = arith.addf %52, %58 : vector<32x128xf32>
    %cst_29 = arith.constant 0.797884583 : f32
    %60 = vector.broadcast %cst_29 : f32 to vector<32x128xf32>
    %61 = arith.mulf %60, %59 : vector<32x128xf32>
    %62 = math.tanh %61 : vector<32x128xf32>
    %cst_30 = arith.constant 1.000000e+00 : f32
    %63 = vector.broadcast %cst_30 : f32 to vector<32x128xf32>
    %64 = arith.addf %63, %62 : vector<32x128xf32>
    %65 = arith.mulf %54, %64 : vector<32x128xf32>
    %66 = arith.truncf %65 : vector<32x128xf32> to vector<32x128xbf16>
    %cst_31 = arith.constant dense<0.000000e+00> : vector<32x128xf32>
    %67 = tpu.matmul %66, %14, %cst_31 {dimension_numbers = #tpu.dot_dimension_numbers<[1], [0], [0], [1], [0, 0, 1, 1], [], []>} : vector<32x128xbf16>, vector<128x128xbf16>, vector<32x128xf32> -> vector<32x128xf32>
    %68 = vector.shape_cast %67 : vector<32x128xf32> to vector<4x8x128xf32>
    %cst_32 = arith.constant 0.000000e+00 : f32
    %69 = vector.broadcast %cst_32 : f32 to vector<8x128xf32>
    %70 = vector.extract_strided_slice %18 {offsets = [0, 0], sizes = [8, 1], strides = [1, 1]} : vector<8x4xf32> to vector<8x1xf32>
    %71 = vector.extract_strided_slice %68 {offsets = [0, 0, 0], sizes = [1, 8, 128], strides = [1, 1, 1]} : vector<4x8x128xf32> to vector<1x8x128xf32>
    %72 = vector.shape_cast %71 : vector<1x8x128xf32> to vector<8x128xf32>
    %73 = vector.broadcast %70 : vector<8x1xf32> to vector<8x128xf32>
    %74 = arith.mulf %73, %72 : vector<8x128xf32>
    %75 = arith.addf %69, %74 : vector<8x128xf32>
    %76 = vector.extract_strided_slice %18 {offsets = [0, 1], sizes = [8, 1], strides = [1, 1]} : vector<8x4xf32> to vector<8x1xf32>
    %77 = vector.extract_strided_slice %68 {offsets = [1, 0, 0], sizes = [1, 8, 128], strides = [1, 1, 1]} : vector<4x8x128xf32> to vector<1x8x128xf32>
    %78 = vector.shape_cast %77 : vector<1x8x128xf32> to vector<8x128xf32>
    %79 = vector.broadcast %76 : vector<8x1xf32> to vector<8x128xf32>
    %80 = arith.mulf %79, %78 : vector<8x128xf32>
    %81 = arith.addf %75, %80 : vector<8x128xf32>
    %82 = vector.extract_strided_slice %18 {offsets = [0, 2], sizes = [8, 1], strides = [1, 1]} : vector<8x4xf32> to vector<8x1xf32>
    %83 = vector.extract_strided_slice %68 {offsets = [2, 0, 0], sizes = [1, 8, 128], strides = [1, 1, 1]} : vector<4x8x128xf32> to vector<1x8x128xf32>
    %84 = vector.shape_cast %83 : vector<1x8x128xf32> to vector<8x128xf32>
    %85 = vector.broadcast %82 : vector<8x1xf32> to vector<8x128xf32>
    %86 = arith.mulf %85, %84 : vector<8x128xf32>
    %87 = arith.addf %81, %86 : vector<8x128xf32>
    %88 = vector.extract_strided_slice %18 {offsets = [0, 3], sizes = [8, 1], strides = [1, 1]} : vector<8x4xf32> to vector<8x1xf32>
    %89 = vector.extract_strided_slice %68 {offsets = [3, 0, 0], sizes = [1, 8, 128], strides = [1, 1, 1]} : vector<4x8x128xf32> to vector<1x8x128xf32>
    %90 = vector.shape_cast %89 : vector<1x8x128xf32> to vector<8x128xf32>
    %91 = vector.broadcast %88 : vector<8x1xf32> to vector<8x128xf32>
    %92 = arith.mulf %91, %90 : vector<8x128xf32>
    %93 = arith.addf %87, %92 : vector<8x128xf32>
    %cst_33 = arith.constant dense<0.000000e+00> : vector<8xf32>
    %94 = vector.multi_reduction <add>, %18, %cst_33 [1] : vector<8x4xf32> to vector<8xf32>
    %95 = vector.shape_cast %94 : vector<8xf32> to vector<8x1xf32>
    %96 = vector.broadcast %95 : vector<8x1xf32> to vector<8x128xf32>
    %97 = vector.broadcast %4 : vector<1x128xf32> to vector<8x128xf32>
    %98 = arith.mulf %96, %97 : vector<8x128xf32>
    %99 = arith.addf %93, %98 : vector<8x128xf32>
    %cst_34 = arith.constant 0.0333333351 : f32
    %100 = vector.broadcast %cst_34 : f32 to vector<8x128xf32>
    %101 = arith.mulf %99, %100 : vector<8x128xf32>
    %102 = arith.addf %0, %101 : vector<8x128xf32>
    %cst_35 = arith.constant dense<0.000000e+00> : vector<8xf32>
    %103 = vector.multi_reduction <add>, %102, %cst_35 [1] : vector<8x128xf32> to vector<8xf32>
    %104 = vector.shape_cast %103 : vector<8xf32> to vector<8x1xf32>
    %cst_36 = arith.constant 1.280000e+02 : f32
    %105 = vector.broadcast %cst_36 : f32 to vector<8x1xf32>
    %106 = arith.divf %104, %105 : vector<8x1xf32>
    %107 = vector.broadcast %106 : vector<8x1xf32> to vector<8x128xf32>
    %108 = arith.subf %102, %107 : vector<8x128xf32>
    %109 = vector.broadcast %106 : vector<8x1xf32> to vector<8x128xf32>
    %110 = arith.subf %102, %109 : vector<8x128xf32>
    %111 = arith.mulf %108, %110 : vector<8x128xf32>
    %cst_37 = arith.constant dense<0.000000e+00> : vector<8xf32>
    %112 = vector.multi_reduction <add>, %111, %cst_37 [1] : vector<8x128xf32> to vector<8xf32>
    %113 = vector.shape_cast %112 : vector<8xf32> to vector<8x1xf32>
    %cst_38 = arith.constant 1.280000e+02 : f32
    %114 = vector.broadcast %cst_38 : f32 to vector<8x1xf32>
    %115 = arith.divf %113, %114 : vector<8x1xf32>
    %116 = vector.broadcast %106 : vector<8x1xf32> to vector<8x128xf32>
    %117 = arith.subf %102, %116 : vector<8x128xf32>
    %cst_39 = arith.constant 9.99999974E-6 : f32
    %118 = vector.broadcast %cst_39 : f32 to vector<8x1xf32>
    %119 = arith.addf %115, %118 : vector<8x1xf32>
    %120 = math.rsqrt %119 : vector<8x1xf32>
    %121 = vector.broadcast %120 : vector<8x1xf32> to vector<8x128xf32>
    %122 = arith.mulf %117, %121 : vector<8x128xf32>
    %123 = vector.broadcast %6 : vector<1x128xf32> to vector<8x128xf32>
    %124 = arith.mulf %122, %123 : vector<8x128xf32>
    %125 = vector.broadcast %7 : vector<1x128xf32> to vector<8x128xf32>
    %126 = arith.addf %124, %125 : vector<8x128xf32>
    %127 = arith.truncf %126 : vector<8x128xf32> to vector<8x128xbf16>
    %cst_40 = arith.constant dense<0.000000e+00> : vector<8x512xf32>
    %128 = tpu.matmul %127, %15, %cst_40 {dimension_numbers = #tpu.dot_dimension_numbers<[1], [0], [0], [1], [0, 0, 1, 1], [], []>} : vector<8x128xbf16>, vector<128x512xbf16>, vector<8x512xf32> -> vector<8x512xf32>
    %129 = vector.broadcast %10 : vector<1x512xf32> to vector<8x512xf32>
    %130 = arith.addf %128, %129 : vector<8x512xf32>
    %cst_41 = arith.constant 5.000000e-01 : f32
    %131 = vector.broadcast %cst_41 : f32 to vector<8x512xf32>
    %132 = arith.mulf %131, %130 : vector<8x512xf32>
    %cst_42 = arith.constant 4.471500e-02 : f32
    %133 = vector.broadcast %cst_42 : f32 to vector<8x512xf32>
    %134 = arith.mulf %133, %130 : vector<8x512xf32>
    %135 = arith.mulf %134, %130 : vector<8x512xf32>
    %136 = arith.mulf %135, %130 : vector<8x512xf32>
    %137 = arith.addf %130, %136 : vector<8x512xf32>
    %cst_43 = arith.constant 0.797884583 : f32
    %138 = vector.broadcast %cst_43 : f32 to vector<8x512xf32>
    %139 = arith.mulf %138, %137 : vector<8x512xf32>
    %140 = math.tanh %139 : vector<8x512xf32>
    %cst_44 = arith.constant 1.000000e+00 : f32
    %141 = vector.broadcast %cst_44 : f32 to vector<8x512xf32>
    %142 = arith.addf %141, %140 : vector<8x512xf32>
    %143 = arith.mulf %132, %142 : vector<8x512xf32>
    %144 = arith.truncf %143 : vector<8x512xf32> to vector<8x512xbf16>
    %cst_45 = arith.constant dense<0.000000e+00> : vector<8x128xf32>
    %145 = tpu.matmul %144, %16, %cst_45 {dimension_numbers = #tpu.dot_dimension_numbers<[1], [0], [0], [1], [0, 0, 1, 1], [], []>} : vector<8x512xbf16>, vector<512x128xbf16>, vector<8x128xf32> -> vector<8x128xf32>
    %146 = vector.broadcast %5 : vector<1x128xf32> to vector<8x128xf32>
    %147 = arith.addf %145, %146 : vector<8x128xf32>
    %148 = arith.addf %126, %147 : vector<8x128xf32>
    %cst_46 = arith.constant dense<0.000000e+00> : vector<8xf32>
    %149 = vector.multi_reduction <add>, %148, %cst_46 [1] : vector<8x128xf32> to vector<8xf32>
    %150 = vector.shape_cast %149 : vector<8xf32> to vector<8x1xf32>
    %cst_47 = arith.constant 1.280000e+02 : f32
    %151 = vector.broadcast %cst_47 : f32 to vector<8x1xf32>
    %152 = arith.divf %150, %151 : vector<8x1xf32>
    %153 = vector.broadcast %152 : vector<8x1xf32> to vector<8x128xf32>
    %154 = arith.subf %148, %153 : vector<8x128xf32>
    %155 = vector.broadcast %152 : vector<8x1xf32> to vector<8x128xf32>
    %156 = arith.subf %148, %155 : vector<8x128xf32>
    %157 = arith.mulf %154, %156 : vector<8x128xf32>
    %cst_48 = arith.constant dense<0.000000e+00> : vector<8xf32>
    %158 = vector.multi_reduction <add>, %157, %cst_48 [1] : vector<8x128xf32> to vector<8xf32>
    %159 = vector.shape_cast %158 : vector<8xf32> to vector<8x1xf32>
    %cst_49 = arith.constant 1.280000e+02 : f32
    %160 = vector.broadcast %cst_49 : f32 to vector<8x1xf32>
    %161 = arith.divf %159, %160 : vector<8x1xf32>
    %162 = vector.broadcast %152 : vector<8x1xf32> to vector<8x128xf32>
    %163 = arith.subf %148, %162 : vector<8x128xf32>
    %cst_50 = arith.constant 9.99999974E-6 : f32
    %164 = vector.broadcast %cst_50 : f32 to vector<8x1xf32>
    %165 = arith.addf %161, %164 : vector<8x1xf32>
    %166 = math.rsqrt %165 : vector<8x1xf32>
    %167 = vector.broadcast %166 : vector<8x1xf32> to vector<8x128xf32>
    %168 = arith.mulf %163, %167 : vector<8x128xf32>
    %169 = vector.broadcast %8 : vector<1x128xf32> to vector<8x128xf32>
    %170 = arith.mulf %168, %169 : vector<8x128xf32>
    %171 = vector.broadcast %9 : vector<1x128xf32> to vector<8x128xf32>
    %172 = arith.addf %170, %171 : vector<8x128xf32>
    %173 = vector.broadcast %19 : vector<8x1xf32> to vector<8x128xf32>
    %174 = arith.mulf %172, %173 : vector<8x128xf32>
    %c0_51 = arith.constant 0 : index
    %c0_52 = arith.constant 0 : index
    %175 = vector.load %arg12[%c0_51, %c0_52] : memref<8x128xf32, #tpu.memory_space<vmem>>, vector<8x128xf32>
    tpu.vector_store %arg12[%c0_51, %c0_52], %174 {strides = array<i32>} : memref<8x128xf32, #tpu.memory_space<vmem>>, vector<8x128xf32>,
    return
  }
  func.func @transform_0(%arg0: i32) -> (i32, i32) {
    %c0_i32 = arith.constant 0 : i32
    %c0_i32_0 = arith.constant 0 : i32
    return %arg0, %c0_i32 : i32, i32
  }
  func.func @transform_1(%arg0: i32) -> (i32, i32) {
    %c0_i32 = arith.constant 0 : i32
    %c0_i32_0 = arith.constant 0 : i32
    return %arg0, %c0_i32 : i32, i32
  }
  func.func @transform_2(%arg0: i32) -> (i32, i32) {
    %c0_i32 = arith.constant 0 : i32
    %c0_i32_0 = arith.constant 0 : i32
    return %arg0, %c0_i32 : i32, i32
  }
  func.func @transform_3(%arg0: i32) -> (i32, i32) {
    %c0_i32 = arith.constant 0 : i32
    %c0_i32_0 = arith.constant 0 : i32
    %c0_i32_1 = arith.constant 0 : i32
    return %c0_i32, %c0_i32_0 : i32, i32
  }
  func.func @transform_4(%arg0: i32) -> (i32, i32) {
    %c0_i32 = arith.constant 0 : i32
    %c0_i32_0 = arith.constant 0 : i32
    %c0_i32_1 = arith.constant 0 : i32
    return %c0_i32, %c0_i32_0 : i32, i32
  }
  func.func @transform_5(%arg0: i32) -> (i32, i32) {
    %c0_i32 = arith.constant 0 : i32
    %c0_i32_0 = arith.constant 0 : i32
    %c0_i32_1 = arith.constant 0 : i32
    return %c0_i32, %c0_i32_0 : i32, i32
  }
  func.func @transform_6(%arg0: i32) -> (i32, i32) {
    %c0_i32 = arith.constant 0 : i32
    %c0_i32_0 = arith.constant 0 : i32
    %c0_i32_1 = arith.constant 0 : i32
    return %c0_i32, %c0_i32_0 : i32, i32
  }
  func.func @transform_7(%arg0: i32) -> (i32, i32) {
    %c0_i32 = arith.constant 0 : i32
    %c0_i32_0 = arith.constant 0 : i32
    %c0_i32_1 = arith.constant 0 : i32
    return %c0_i32, %c0_i32_0 : i32, i32
  }
  func.func @transform_8(%arg0: i32) -> (i32, i32) {
    %c0_i32 = arith.constant 0 : i32
    %c0_i32_0 = arith.constant 0 : i32
    %c0_i32_1 = arith.constant 0 : i32
    return %c0_i32, %c0_i32_0 : i32, i32
  }
  func.func @transform_9(%arg0: i32) -> (i32, i32) {
    %c0_i32 = arith.constant 0 : i32
    %c0_i32_0 = arith.constant 0 : i32
    %c0_i32_1 = arith.constant 0 : i32
    return %c0_i32, %c0_i32_0 : i32, i32
  }
  func.func @transform_10(%arg0: i32) -> (i32, i32) {
    %c0_i32 = arith.constant 0 : i32
    %c0_i32_0 = arith.constant 0 : i32
    %c0_i32_1 = arith.constant 0 : i32
    return %c0_i32, %c0_i32_0 : i32, i32
  }
  func.func @transform_11(%arg0: i32) -> (i32, i32) {
    %c0_i32 = arith.constant 0 : i32
    %c0_i32_0 = arith.constant 0 : i32
    return %arg0, %c0_i32 : i32, i32
  }
}

</mosaic_0001>

<bundles_post_ra>
// kernel: tpu_custom_call.1
= control target key start
LH: loop header
LB: loop body
LE: loop exit
PB: predicated region body
PF: predicated region fallthrough
CT: control target
= control target key end

     0   :  { %s3640_s0 = inlined_call_operand.vmem [shape: f32[16,128], index: 0, kind: input, shape index: {}]   ;;  %s3641_s1 = inlined_call_operand.hbm [shape: bf16[16,1536], index: 1, kind: input, shape index: {}]   ;;  %s3642_s2 = inlined_call_operand.vmem [shape: f32[16,5], index: 2, kind: input, shape index: {}]   ;;  %s3643_s3 = inlined_call_operand.hbm [shape: bf16[128,128], index: 3, kind: input, shape index: {}]   ;;  %s3644_s4 = inlined_call_operand.hbm [shape: bf16[384,128], index: 4, kind: input, shape index: {}]   ;;  %s3645_s5 = inlined_call_operand.hbm [shape: bf16[128,128], index: 5, kind: input, shape index: {}]   ;;  %s3646_s6 = inlined_call_operand.hbm [shape: bf16[128,128], index: 6, kind: input, shape index: {}]   ;;  %s3647_s7 = inlined_call_operand.hbm [shape: bf16[128,512], index: 7, kind: input, shape index: {}]   ;;  %s3648_s8 = inlined_call_operand.hbm [shape: bf16[512,128], index: 8, kind: input, shape index: {}]   ;;  %s3649_s9 = inlined_call_operand.vmem [shape: f32[8,128], index: 9, kind: input, shape index: {}]   ;;  %s3650_s10 = inlined_call_operand.vmem [shape: f32[1,512], index: 10, kind: input, shape index: {}]   ;;  %s3651_s11 = inlined_call_operand.hbm [shape: f32[16,128], index: 11, kind: output, shape index: {}]  }
   0x1   :  { %3660 = sst [smem:[#allocation20_spill]] %s3642_s2 }
   0x2   :  { %3661 = sst [smem:[#allocation21_spill]] %s3643_s3 }
   0x3   :  { %3662 = sst [smem:[#allocation22_spill]] %s3645_s5 }
   0x4   :  { %3663 = sst [smem:[#allocation23_spill]] %s3650_s10 }
   0x5   :  { %3664 = sst [smem:[#allocation24_spill]] %s3651_s11 }
   0x6   :  { %16 = vsyncpa [#allocation3], 0 }
   0x7   :  { %18 = vsyncpa [#allocation3 + $0x1], 0 }
   0x8   :  { %19 = vsyncpa [#allocation6], 0 }
   0x9   :  { %20 = vsyncpa [#allocation9], 0 }
   0xa   :  { %21 = vsyncpa [#allocation12], 0 }
   0xb   :  { %22 = vsyncpa [#allocation4], 0 }
   0xc   :  { %24 = vsyncpa [#allocation4 + $0x1], 0  ;;  %s3218_s17 = smov 0   ;;  %s3220_s18 = smov 0  }
   0xd   :  { %s3222_s19 = smov 0   ;;  %s3224_s20 = smov 0  }
   0xe LB: > { %s3139_s21 = smov [#allocation5]   ;;  %s3239_s23 = sadd.s32 4294967295, %s3137_s20   ;;  %s3137_s20 = sphi %s3224_s20, %s3693_s20   ;;  %s3133_s19 = sphi %s3222_s19, %s3692_s19   ;;  %s3129_s18 = sphi %s3220_s18, %s3691_s18   ;;  %s3125_s17 = sphi %s3218_s17, %s3690_s17  }
   0xf   : > { %s319_s22 = sshll.u32 %s3139_s21, 4  ;;  %p2228_p0 = scmp.ge.s32.totalorder %s3137_s20, 1  ;;  %s3244_s22 = int_to_ptr.vmem [resolvable:$true] %s319_s22 }
  0x10   : > { %p3657_p1 = scmp.eq.s32.totalorder %s3239_s23, 0  ;;  %p307_p2 = scmp.lt.s32.totalorder %s3137_s20, 3 }
  0x11   : > { %s3140_s25 = smov [#allocation8]   ;;  %s3141_s28 = smov [#allocation11]  }
  0x12   : > { %p3246_p3 = pnand %p2228_p0, %p307_p2  ;;  %s345_s26 = sshll.u32 %s3140_s25, 4  ;;  %s3259_s26 = int_to_ptr.vmem [resolvable:$true] %s345_s26 }
  0x13   : > { %s371_s29 = sshll.u32 %s3141_s28, 4  ;;  %s3667_s3 = sld [smem:[#allocation21_spill]]  ;;  %s3261_s29 = int_to_ptr.vmem [resolvable:$true] %s371_s29 }
  0x14   : > { %s3665_s24 = scalar_select %p3246_p3, 1, 0 }
  0x15   : > { %p2597_p5 = pneg %p3246_p3 }
  0x17   : > { %p3255_p6 = pnand %p2597_p5, %p3657_p1 }
  0x19   : > { %s2861_s13 = scalar_lea.hbm %s3667_s3, 1024  ;;  %p3271_p8 = pneg %p3255_p6 }
  0x1a   : > { %p2862_p7 = scmp.ne.s32.totalorder %s3667_s3, %s2861_s13  ;;  %p2868_p11 = scmp.lt.u32.totalorder %s2861_s13, %s3667_s3 }
  0x1c   : > { %p2864_p9 = pnand %p3271_p8, %p2862_p7 }
  0x1e   : > { %p2865_p10 = pneg %p2864_p9 }
  0x20   : > { %p2870_p12 = pnand %p2868_p11, %p2865_p10 }
  0x22   : > { %2873 = shalt.err (!%p2870_p12)
}
  0x23   : > { %s2874_s28 = scalar_lea.vmem %s3244_s22, 1024  ;;  %p2882_p5 = scmp.lt.s32.totalorder %s3244_s22, %s3244_s22 }
  0x24   : > { %p2875_p13 = scmp.ne.s32.totalorder %s3244_s22, %s2874_s28  ;;  %p2883_p4 = scmp.lt.s32.totalorder %s2874_s28, %s2874_s28 }
  0x26   : > { %p2877_p0 = pnand %p2875_p13, %p3271_p8  ;;  %p2884_p7 = por %p2883_p4, %p2882_p5 }
  0x28   : > { %p2878_p2 = pneg %p2877_p0 }
  0x2a   : > { %p2885_p9 = pnand %p2884_p7, %p2878_p2 }
  0x2c   : > { %2888 = shalt.err (!%p2885_p9)
}
  0x2d   : > { %s3653_s30 = smov 64   ;;  %s3655_s12 = smov 4  }
  0x2e   : > { %2600 = dma.hbm_to_vmem [thread:$0]  (!%p3255_p6), %s3667_s3, 1024, %s3244_s22, [#allocation6], %s3653_s30, %s3653_s30, %s3655_s12  }
  0x2f   : > { %s3669_s5 = sld [smem:[#allocation22_spill]] }
  0x35   : > { %s2889_s25 = scalar_lea.hbm %s3669_s5, 1024 }
  0x36   : > { %p2890_p4 = scmp.ne.s32.totalorder %s3669_s5, %s2889_s25  ;;  %p2896_p12 = scmp.lt.u32.totalorder %s2889_s25, %s3669_s5 }
  0x38   : > { %p2892_p10 = pnand %p2890_p4, %p3271_p8 }
  0x3a   : > { %p2893_p11 = pneg %p2892_p10 }
  0x3c   : > { %p2898_p13 = pnand %p2896_p12, %p2893_p11 }
  0x3e   : > { %2901 = shalt.err (!%p2898_p13)
}
  0x3f   : > { %s2902_s22 = scalar_lea.vmem %s3259_s26, 1024  ;;  %p2910_p7 = scmp.lt.s32.totalorder %s3259_s26, %s3259_s26 }
  0x40   : > { %p2903_p0 = scmp.ne.s32.totalorder %s3259_s26, %s2902_s22  ;;  %p2911_p9 = scmp.lt.s32.totalorder %s2902_s22, %s2902_s22 }
  0x42   : > { %p2905_p2 = pnand %p2903_p0, %p3271_p8  ;;  %p2912_p4 = por %p2911_p9, %p2910_p7 }
  0x44   : > { %p2906_p5 = pneg %p2905_p2 }
  0x46   : > { %p2913_p10 = pnand %p2912_p4, %p2906_p5 }
  0x48   : > { %2916 = shalt.err (!%p2913_p10)
}
  0x49   : > { %2606 = dma.hbm_to_vmem [thread:$0]  (!%p3255_p6), %s3669_s5, 1024, %s3259_s26, [#allocation9], %s3653_s30, %s3653_s30, %s3655_s12  }
  0x4a   : > { %s2917_s14 = scalar_lea.hbm %s3647_s7, 4096 }
  0x4b   : > { %p2918_p11 = scmp.ne.s32.totalorder %s3647_s7, %s2917_s14  ;;  %p2924_p0 = scmp.lt.u32.totalorder %s2917_s14, %s3647_s7 }
  0x4d   : > { %p2920_p12 = pnand %p2918_p11, %p3271_p8 }
  0x4f   : > { %p2921_p13 = pneg %p2920_p12 }
  0x51   : > { %p2926_p2 = pnand %p2924_p0, %p2921_p13 }
  0x53   : > { %2929 = shalt.err (!%p2926_p2)
}
  0x54   : > { %s2930_s26 = scalar_lea.vmem %s3261_s29, 4096  ;;  %p2938_p4 = scmp.lt.s32.totalorder %s3261_s29, %s3261_s29 }
  0x55   : > { %p2931_p5 = scmp.ne.s32.totalorder %s3261_s29, %s2930_s26  ;;  %p2939_p10 = scmp.lt.s32.totalorder %s2930_s26, %s2930_s26 }
  0x57   : > { %p2933_p7 = pnand %p2931_p5, %p3271_p8  ;;  %p2940_p11 = por %p2939_p10, %p2938_p4 }
  0x59   : > { %p2934_p9 = pneg %p2933_p7 }
  0x5b   : > { %p2941_p12 = pnand %p2940_p11, %p2934_p9 }
  0x5d   : > { %2944 = shalt.err (!%p2941_p12)
}
  0x5e   : > { %s3144_s22 = smov 256   ;;  %s3145_s2 = smov 16  }
  0x5f   : > { %2612 = dma.hbm_to_vmem [thread:$0]  (!%p3255_p6), %s3647_s7, 4096, %s3261_s29, [#allocation12], %s3144_s22, %s3144_s22, %s3145_s2  }
  0x60   : > { %s3146_s13 = smov [#allocation7]   ;;  %s3147_s15 = smov [#allocation10]  }
  0x61   : > { %s332_s14 = sshll.u32 %s3146_s13, 4  ;;  %s358_s21 = sshll.u32 %s3147_s15, 4  ;;  %s333_s14 = int_to_ptr.vmem [resolvable:$true] %s332_s14  ;;  %s359_s21 = int_to_ptr.vmem [resolvable:$true] %s358_s21 }
  0x62   : > { %s2945_s26 = scalar_lea.hbm %s3644_s4, 3072 }
  0x63   : > { %p2946_p13 = scmp.ne.s32.totalorder %s3644_s4, %s2945_s26  ;;  %p2952_p5 = scmp.lt.u32.totalorder %s2945_s26, %s3644_s4 }
  0x65   : > { %p2948_p0 = pnand %p2946_p13, %p3271_p8 }
  0x67   : > { %p2949_p2 = pneg %p2948_p0 }
  0x69   : > { %p2954_p7 = pnand %p2952_p5, %p2949_p2 }
  0x6b   : > { %2957 = shalt.err (!%p2954_p7)
}
  0x6c   : > { %s2958_s29 = scalar_lea.vmem %s333_s14, 3072  ;;  %p2966_p11 = scmp.lt.s32.totalorder %s333_s14, %s333_s14 }
  0x6d   : > { %p2959_p9 = scmp.ne.s32.totalorder %s333_s14, %s2958_s29  ;;  %p2967_p12 = scmp.lt.s32.totalorder %s2958_s29, %s2958_s29 }
  0x6f   : > { %p2961_p4 = pnand %p2959_p9, %p3271_p8  ;;  %p2968_p1 = por %p2967_p12, %p2966_p11 }
  0x71   : > { %p2962_p10 = pneg %p2961_p4 }
  0x73   : > { %p2969_p3 = pnand %p2968_p1, %p2962_p10 }
  0x75   : > { %2972 = shalt.err (!%p2969_p3)
}
  0x76   : > { %s3670_s30 = smov 4   ;;  %s3671_s12 = smov 64  }
  0x77   : > { %2603 = dma.hbm_to_vmem [thread:$0]  (!%p3255_p6), %s3644_s4, 3072, %s333_s14, [#allocation6], %s3671_s12, %s3671_s12, %s3670_s30  }
  0x78   : > { %s2973_s10 = scalar_lea.hbm %s3646_s6, 1024 }
  0x79   : > { %p2974_p1 = scmp.ne.s32.totalorder %s3646_s6, %s2973_s10  ;;  %p2980_p0 = scmp.lt.u32.totalorder %s2973_s10, %s3646_s6 }
  0x7b   : > { %p2976_p3 = pnand %p2974_p1, %p3271_p8 }
  0x7d   : > { %p2977_p13 = pneg %p2976_p3 }
  0x7f   : > { %p2982_p2 = pnand %p2980_p0, %p2977_p13 }
  0x81   : > { %2985 = shalt.err (!%p2982_p2)
}
  0x82   : > { %s2986_s28 = scalar_lea.vmem %s359_s21, 1024  ;;  %p2994_p4 = scmp.lt.s32.totalorder %s359_s21, %s359_s21 }
  0x83   : > { %p2987_p5 = scmp.ne.s32.totalorder %s359_s21, %s2986_s28  ;;  %p2995_p10 = scmp.lt.s32.totalorder %s2986_s28, %s2986_s28 }
  0x85   : > { %p2989_p7 = pnand %p2987_p5, %p3271_p8  ;;  %p2996_p11 = por %p2995_p10, %p2994_p4 }
  0x87   : > { %p2990_p9 = pneg %p2989_p7 }
  0x89   : > { %p2997_p12 = pnand %p2996_p11, %p2990_p9 }
  0x8b   : > { %3000 = shalt.err (!%p2997_p12)
}
  0x8c   : > { %2609 = dma.hbm_to_vmem [thread:$0]  (!%p3255_p6), %s3646_s6, 1024, %s359_s21, [#allocation9], %s3671_s12, %s3671_s12, %s3670_s30  }
  0x8d   : > { %s3148_s29 = smov [#allocation13]   ;;  %s3001_s2 = scalar_lea.hbm %s3648_s8, 4096 }
  0x8e   : > { %s384_s3 = sshll.u32 %s3148_s29, 4  ;;  %p3002_p1 = scmp.ne.s32.totalorder %s3648_s8, %s3001_s2  ;;  %s385_s3 = int_to_ptr.vmem [resolvable:$true] %s384_s3 }
  0x8f   : > { %p3008_p0 = scmp.lt.u32.totalorder %s3001_s2, %s3648_s8 }
  0x90   : > { %p3004_p3 = pnand %p3002_p1, %p3271_p8 }
  0x92   : > { %p3005_p13 = pneg %p3004_p3 }
  0x94   : > { %p3010_p2 = pnand %p3008_p0, %p3005_p13 }
  0x96   : > { %3013 = shalt.err (!%p3010_p2)
}
  0x97   : > { %s3014_s21 = scalar_lea.vmem %s385_s3, 4096  ;;  %p3022_p4 = scmp.lt.s32.totalorder %s385_s3, %s385_s3 }
  0x98   : > { %p3015_p5 = scmp.ne.s32.totalorder %s385_s3, %s3014_s21  ;;  %p3023_p10 = scmp.lt.s32.totalorder %s3014_s21, %s3014_s21 }
  0x9a   : > { %p3017_p7 = pnand %p3015_p5, %p3271_p8  ;;  %p3024_p11 = por %p3023_p10, %p3022_p4 }
  0x9c   : > { %p3018_p9 = pneg %p3017_p7 }
  0x9e   : > { %p3025_p12 = pnand %p3024_p11, %p3018_p9 }
  0xa0   : > { %3028 = shalt.err (!%p3025_p12)
}
  0xa1   : > { %2615 = dma.hbm_to_vmem [thread:$0]  (!%p3255_p6), %s3648_s8, 4096, %s385_s3, [#allocation12], %s3671_s12, %s3671_s12, %s3670_s30  }
  0xa2   : > { %s2227_s27 = sadd.s32 4294967294, %s3137_s20   ;;  %s3409_s16 = sadd.s32 1, %s3137_s20  }
  0xa3   : > { %s60_s14 = ssub.s32 %s3137_s20, %s3409_s16  ;;  %s63_s26 = sadd.s32 1, %s3133_s19 }
  0xa4   : > { %p61_p8 = scmp.eq.s32.totalorder %s60_s14, 0  ;;  %p70_p1 = scmp.ne.s32.totalorder %s3133_s19, %s3129_s18 }
  0xa5   : > { %p71_p3 = scmp.eq.s32.totalorder %s3137_s20, 0  ;;  %p76_p13 = scmp.ne.s32.totalorder %s3129_s18, %s3125_s17 }
  0xa6   : > { %s3420_s29 = scalar_select %p61_p8, %s3133_s19, %s63_s26  }
  0xa7   : > { %p72_p0 = por %p71_p3, %p70_p1  ;;  %p3672_p2 = scmp.eq.s32.totalorder %s3239_s23, 0 }
  0xa8   : > { %p294_p6 = scmp.eq.s32.totalorder %s3239_s23, 1  ;;  %p300_p7 = scmp.eq.s32.totalorder %s2227_s27, 1 }
  0xa9   : > { %p3424_p5 = por %p3672_p2, %p76_p13  ;;  %p2630_p9 = scmp.lt.s32.totalorder %s3137_s20, 2 }
  0xaa   : > { %s411_s30 = sand.u32 1, %s3133_s19   ;;  %p3431_p4 = por %p294_p6, %p70_p1 }
  0xab   : > { %p3435_p10 = por %p300_p7, %p76_p13  ;;  %s2566_s22 = smul.u32 48, %s411_s30 }
  0xac   : > { %s3674_s12 = scalar_select %p3431_p4, 1, 0 }
  0xad   : > { %s3675_s3 = scalar_select %p3435_p10, 1, 0 }
  0xae   : > { %s2567_s2 = smul.u32 768, %s3137_s20  ;;  %p3440_p11 = pnand %p2630_p9, %p72_p0 }
  0xaf   : > { %s415_s21 = scalar_lea.vmem [#allocation2], %s2566_s22  ;;  %s412_s28 = scalar_lea.sflag [#allocation3], %s411_s30 }
  0xb0   : > { %s3447_s15 = scalar_lea.hbm %s3641_s1, %s2567_s2  ;;  %s423_s25 = sshll.u32 %s415_s21, 4  ;;  %s3449_s25 = int_to_ptr.vmem [resolvable:$true] %s423_s25 }
  0xb1   : > { %s3029_s27 = scalar_lea.hbm %s3447_s15, 768  ;;  %p3031_p8 = pneg %p3440_p11 }
  0xb2   : > { %p3030_p12 = scmp.ne.s32.totalorder %s3447_s15, %s3029_s27  ;;  %s3034_s2 = scalar_lea.hbm %s3641_s1, 1536 }
  0xb3   : > { %p3035_p13 = scmp.lt.u32.totalorder %s3447_s15, %s3641_s1  ;;  %p3036_p0 = scmp.lt.u32.totalorder %s3034_s2, %s3029_s27 }
  0xb4   : > { %p3032_p1 = pnand %p3031_p8, %p3030_p12  ;;  %p3038_p6 = scmp.lt.u32.totalorder %s3029_s27, %s3447_s15 }
  0xb5   : > { %p3037_p2 = por %p3036_p0, %p3035_p13 }
  0xb6   : > { %p3033_p3 = pneg %p3032_p1 }
  0xb7   : > { %p3039_p7 = por %p3038_p6, %p3037_p2 }
  0xb9   : > { %p3040_p9 = pnand %p3039_p7, %p3033_p3 }
  0xbb   : > { %3043 = shalt.err (!%p3040_p9)
}
  0xbc   : > { %s3044_s30 = scalar_lea.vmem %s3449_s25, 768  ;;  %s3149_s22 = smov [#allocation2]  }
  0xbd   : > { %p3045_p12 = scmp.ne.s32.totalorder %s3449_s25, %s3044_s30  ;;  %s3049_s21 = sshll.u32 %s3149_s22, 4  ;;  %s3050_s21 = int_to_ptr.vmem [resolvable:$false] %s3049_s21 }
  0xbe   : > { %s3051_s14 = scalar_lea.vmem %s3050_s21, 1536  ;;  %p3052_p4 = scmp.lt.s32.totalorder %s3449_s25, %s3050_s21 }
  0xbf   : > { %p3047_p1 = pnand %p3045_p12, %p3031_p8  ;;  %p3053_p13 = scmp.lt.s32.totalorder %s3051_s14, %s3044_s30 }
  0xc1   : > { %p3048_p10 = pneg %p3047_p1  ;;  %p3054_p0 = por %p3053_p13, %p3052_p4 }
  0xc3   : > { %p3055_p2 = pnand %p3054_p0, %p3048_p10 }
  0xc5   : > { %3058 = shalt.err (!%p3055_p2)
}
  0xc6   : > { %2619 = dma.hbm_to_vmem [thread:$0]  (!%p3440_p11), %s3447_s15, 768, %s3449_s25, %s412_s28  }
  0xc7   : > { %p3677_p3 = scmp.ne.s32.totalorder %s3665_s24, 0 }
  0xc8   : > { %s3479_s27 = sand.u32 (!%p3677_p3), 1, %s3129_s18  }
  0xc9   : > { %439 = sbr.rel (%p3677_p3) target bundleno = 2108 (0x83c), region = 64  ;;  %s442_s2 = scalar_lea.sflag (!%p3677_p3), [#allocation3], %s3479_s27 }
  0xca   : > { %s2568_s26 = smul.u32 (!%p3677_p3), 48, %s3479_s27 }
  0xcc   : > { %s3483_s11 = scalar_lea.vmem (!%p3677_p3), [#allocation2], %s2568_s26 }
  0xd0   : > { %3104 = dma.done.wait (%p3424_p5), %s442_s2, 768  }
  0xd1   : > { %3106 = vsyncadd (%p3424_p5), %s442_s2, 4294966528  ;;  %p3678_p4 = scmp.eq.s32.totalorder %s3239_s23, 0 }
  0xd3   : > { %3108 = dma.done.wait (%p3678_p4), [#allocation6], 4096   ;;  %p3679_p10 = pmov %p3678_p4 }
  0xd4   : > { %p3680_p11 = pmov %p3678_p4 }
  0xd5   : > { %3110 = vsyncadd (%p3679_p10), [#allocation6], 4294963200 }
  0xd6   : > { %3112 = dma.done.wait (%p3680_p11), [#allocation9], 2048   ;;  %p3681_p8 = pmov %p3678_p4 }
  0xd7   : > { %p3682_p6 = pmov %p3678_p4 }
  0xd8   : > { %3114 = vsyncadd (%p3681_p8), [#allocation9], 4294965248 }
  0xd9   : > { %3116 = dma.done.wait (%p3682_p6), [#allocation12], 8192   ;;  %p3683_p7 = pmov %p3678_p4 }
  0xda   : > { %v3150_v0 = vmov 0.0   ;;  %vm3151_vm0 = vmmov 0   ;;  %v2693_v1 = vld [vmem:[#allocation5] sm:$0xff]   ;;  %v2694_v2 = vld [vmem:[#allocation5 + $0x8] sm:$0xff]   ;;  %v2695_v4 = vld [vmem:[#allocation5 + $0x10] sm:$0xff]   ;;  %p516_p5 = scmp.lt.s32.totalorder %s3239_s23, 1 }
  0xdb   : > { %3118 = vsyncadd (%p3683_p7), [#allocation12], 4294959104  ;;  %2486 = vmatprep.subr.bf16.mxu0 %v3150_v0  ;;  %2502 = vmatprep.mubr.msk.bf16.mxu0 %vm3151_vm0, %v3150_v0  ;;  %v2698_v3 = vld [vmem:[#allocation7 + $0x40] sm:$0xff]   ;;  %v2701_v6 = vld [vmem:[#allocation7 + $0x48] sm:$0xff]   ;;  %vm850_vm1 = vcmask 1043456   ;;  %s3684_s21 = sld [smem:[#allocation20_spill]] }
  0xdc   : > { %2487 = vmatpush3.bf16.msra.mxu0 %v2693_v1  ;;  %2384 = vmatprep.subr.bf16.mxu1 %v2698_v3  ;;  %v2700_v5 = vld [vmem:[#allocation7] sm:$0xff]   ;;  %v2696_v7 = vld [vmem:[#allocation5 + $0x18] sm:$0xff]   ;;  %v2703_v8 = vld [vmem:[#allocation7 + $0x8] sm:$0xff]   ;;  %s3503_s24 = scalar_select %p516_p5, %s3239_s23, 1  ;;  %vm1420_vm2 = vcmask 31744  }
  0xdd   : > { %2488 = vmatprep.subr.bf16.mxu0 %v3150_v0  ;;  %2385 = vmatpush3.bf16.msra.mxu1 %v2700_v5  ;;  %v2704_v9 = vld [vmem:[#allocation7 + $0x50] sm:$0xff]   ;;  %v2697_v11 = vld [vmem:[#allocation5 + $0x20] sm:$0xff]   ;;  %v2707_v12 = vld [vmem:[#allocation7 + $0x58] sm:$0xff]   ;;  %s3686_s13 = sld [smem:[#allocation24_spill]]  ;;  %s2063_s22 = scalar_lea.sflag [#allocation4], %s3479_s27 }
  0xde   : > { %2386 = vmatprep.subr.bf16.mxu1 %v2701_v6  ;;  %v2706_v10 = vld [vmem:[#allocation7 + $0x10] sm:$0xff]   ;;  %v2699_v13 = vld [vmem:[#allocation5 + $0x28] sm:$0xff]   ;;  %v2709_v14 = vld [vmem:[#allocation7 + $0x18] sm:$0xff]   ;;  %s2245_s5 = sshll.u32 %s3503_s24, 3  ;;  %s2244_s24 = sshll.u32 %s3479_s27, 3 }
  0xdf   : > { %v2710_v15 = vld [vmem:[#allocation7 + $0x60] sm:$0xff]   ;;  %v2702_v16 = vld [vmem:[#allocation5 + $0x30] sm:$0xff]   ;;  %s519_s25 = scalar_lea.vmem %s3640_s0, %s2245_s5  ;;  %v2713_v18 = vld [vmem:[#allocation7 + $0x68] sm:$0xff]   ;;  %s515_s10 = scalar_lea.vmem [#allocation14], %s2244_s24 }
  0xe0   : > { %2489 = vmatpush3.bf16.msra.mxu0 %v2694_v2  ;;  %v2712_v17 = vld [vmem:[#allocation7 + $0x20] sm:$0xff]   ;;  %v2705_v19 = vld [vmem:[#allocation5 + $0x38] sm:$0xff]   ;;  %v2715_v21 = vld [vmem:[#allocation7 + $0x28] sm:$0xff]   ;;  %s2076_s15 = sshll.u32 %s515_s10, 4  ;;  %p3687_p12 = scmp.ne.s32.totalorder %s3674_s12, 0  ;;  %s3598_s15 = int_to_ptr.vmem [resolvable:$true] %s2076_s15 }
  0xe1   : > { %2490 = vmatprep.subr.bf16.mxu0 %v3150_v0  ;;  %2387 = vmatpush3.bf16.msra.mxu1 %v2703_v8  ;;  %v3511_v20 = vld [vmem:[%s519_s25] sm:$0xff]  ;;  %v2716_v22 = vld [vmem:[#allocation7 + $0x70] sm:$0xff]   ;;  %v2719_v26 = vld [vmem:[#allocation7 + $0x78] sm:$0xff]   ;;  %s523_s14 = scalar_lea.vmem %s3684_s21, %s2245_s5  ;;  %s2372_s5 = sshll.u32 %s3239_s23, 7 }
  0xe2   : > { %2388 = vmatprep.subr.bf16.mxu1 %v2704_v9  ;;  %v2708_v23 = vld [vmem:[#allocation7 + $0x80] sm:$0xff]   ;;  %v2718_v24 = vld [vmem:[#allocation7 + $0x30] sm:$0xff]   ;;  %v721_v25 = vpack.c.bf16 %v3511_v20, %v3511_v20  ;;  %v815_v31 = vld [vmem:[%s3483_s11 + $0x8] sm:$0xff]  ;;  %s3059_s21 = scalar_lea.vmem %s3598_s15, 128  ;;  %s3157_s23 = smov [#allocation14]  }
  0xe3   : > { %v814_v27 = vld [vmem:[%s3483_s11] sm:$0xff]  ;;  %v816_v28 = vld [vmem:[%s3483_s11 + $0x10] sm:$0xff]  ;;  %v2711_v32 = vld [vmem:[#allocation7 + $0x88] sm:$0xff]   ;;  %v2257_v33 = vcombine.low %v815_v31, %v815_v31  ;;  %v2258_v40 = vcombine.high %v815_v31, %v815_v31  ;;  %s3596_s30 = scalar_lea.hbm %s3686_s13, %s2372_s5  ;;  %p3060_p9 = scmp.ne.s32.totalorder %s3598_s15, %s3059_s21 }
  0xe4   : > { %2491 = vmatpush3.bf16.msra.mxu0 %v2695_v4  ;;  %v2256_v29 = vcombine.high %v814_v27, %v814_v27  ;;  %v2259_v30 = vcombine.low %v816_v28, %v816_v28  ;;  %v2260_v34 = vcombine.high %v816_v28, %v816_v28  ;;  %v817_v36 = vld [vmem:[%s3483_s11 + $0x18] sm:$0xff]  ;;  %v819_v37 = vld [vmem:[%s3483_s11 + $0x28] sm:$0xff]  ;;  %v2255_v39 = vcombine.low %v814_v27, %v814_v27  ;;  %v2714_v41 = vld [vmem:[#allocation7 + $0x90] sm:$0xff]  }
  0xe5   : > { %2492 = vmatprep.subr.bf16.mxu0 %v3150_v0  ;;  %2389 = vmatpush3.bf16.msra.mxu1 %v2706_v10  ;;  %v2721_v38 = vld [vmem:[#allocation7 + $0x38] sm:$0xff]   ;;  %v2262_v42 = vcombine.high %v817_v36, %v817_v36  ;;  %v2265_v43 = vcombine.low %v819_v37, %v819_v37  ;;  %v818_v45 = vld [vmem:[%s3483_s11 + $0x20] sm:$0xff]  ;;  %v2261_v50 = vcombine.low %v817_v36, %v817_v36  ;;  %v2726_v52 = vld [vmem:[#allocation7 + $0xa8] sm:$0xff]   ;;  %s3685_s11 = sld [smem:[#allocation23_spill]]  ;;  %p3061_p1 = pnand %p3060_p9, %p3687_p12 }
  0xe6   : > { %2390 = vmatprep.subr.bf16.mxu1 %v2707_v12  ;;  %v857_v35 = vsel %vm850_vm1, %v2256_v29, %v2259_v30  ;;  %v861_v44 = vsel %vm850_vm1, %v2257_v33, %v2260_v34  ;;  %v2717_v46 = vld [vmem:[#allocation7 + $0x98] sm:$0xff]   ;;  %v853_v47 = vsel %vm850_vm1, %v2255_v39, %v2258_v40  ;;  %v2720_v49 = vld [vmem:[#allocation7 + $0xa0] sm:$0xff]   ;;  %v2264_v51 = vcombine.high %v818_v45, %v818_v45  ;;  %v2727_v54 = vld [vmem:[#allocation7 + $0xb0] sm:$0xff]  }
  0xe7   : > { %1051 = vmatprep.mubr.bf16.mxu1 %v857_v35  ;;  %v869_v48 = vsel %vm850_vm1, %v2262_v42, %v2265_v43  ;;  %v2732_v55 = vld [vmem:[#allocation7 + $0xb8] sm:$0xff]   ;;  %v2263_v56 = vcombine.low %v818_v45, %v818_v45  ;;  %v2266_v57 = vcombine.high %v819_v37, %v819_v37  ;;  %v2737_v59 = vld [vmem:[#allocation8] sm:$0xff]   ;;  %v2738_v60 = vld [vmem:[#allocation8 + $0x8] sm:$0xff]   ;;  %p3062_p13 = pneg %p3061_p1 }
  0xe8   : > { %2493 = vmatpush3.bf16.msra.mxu0 %v2696_v7  ;;  %v865_v53 = vsel %vm850_vm1, %v2261_v50, %v2264_v51  ;;  %v2739_v61 = vld [vmem:[#allocation8 + $0x10] sm:$0xff]   ;;  %v2740_v62 = vld [vmem:[#allocation8 + $0x18] sm:$0xff]   ;;  %v2741_v63 = vld [vmem:[#allocation8 + $0x20] sm:$0xff]  }
  0xe9   : > { %2494 = vmatprep.subr.bf16.mxu0 %v3150_v0  ;;  %2391 = vmatpush3.bf16.msra.mxu1 %v2709_v14  ;;  %v873_v58 = vsel %vm850_vm1, %v2263_v56, %v2266_v57  ;;  %v2743_v1 = vld [vmem:[#allocation8 + $0x30] sm:$0xff]   ;;  %v2744_v2 = vld [vmem:[#allocation8 + $0x38] sm:$0xff]  }
  0xea   : > { %2392 = vmatprep.subr.bf16.mxu1 %v2710_v15  ;;  %v722_v15 = vlaneseq }
  0xec   : > { %2495 = vmatpush3.bf16.msra.mxu0 %v2697_v11 }
  0xed   : > { %2496 = vmatprep.subr.bf16.mxu0 %v3150_v0  ;;  %2393 = vmatpush3.bf16.msra.mxu1 %v2712_v17 }
  0xee   : > { %2394 = vmatprep.subr.bf16.mxu1 %v2713_v18 }
  0xf0   : > { %2497 = vmatpush3.bf16.msra.mxu0 %v2699_v13 }
  0xf1   : > { %2498 = vmatprep.subr.bf16.mxu0 %v3150_v0  ;;  %2395 = vmatpush3.bf16.msra.mxu1 %v2715_v21  ;;  %v3527_v21 = vshrl.u32 %v722_v15, 7  ;;  %v2748_v15 = vld [vmem:[#allocation10 + $0x18] sm:$0xff]  }
  0xf2   : > { %2396 = vmatprep.subr.bf16.mxu1 %v2716_v22 }
  0xf3   : > { %v724_v22 = vsub.s32 0, %v3527_v21 }
  0xf4   : > { %2499 = vmatpush3.bf16.msra.mxu0 %v2702_v16 }
  0xf5   : > { %2500 = vmatprep.subr.bf16.mxu0 %v3150_v0  ;;  %2397 = vmatpush3.bf16.msra.mxu1 %v2718_v24  ;;  %v2742_v0 = vld [vmem:[#allocation8 + $0x28] sm:$0xff]  }
  0xf6   : > { %2398 = vmatprep.subr.bf16.mxu1 %v2719_v26 }
  0xf8   : > { %2501 = vmatpush3.bf16.msra.mxu0 %v2705_v19 }
  0xf9   : > { %2506 = vmatprep.subr.bf16.mxu0 %v2708_v23  ;;  %2399 = vmatpush3.bf16.msra.mxu1 %v2721_v38 }
  0xfa   : > { %2526 = vmatprep.subr.bf16.mxu1 %v2737_v59 }
  0xfb   : > { %2503 = vmatmul.mubr.bf16.vlgmr.msra.gmra.mrb[0].mxu0 %v721_v25 }
  0xfc   : > { %2507 = vmatpush3.bf16.msra.mxu0 %v2708_v23  ;;  %2522 = vmatprep.mubr.bf16.mxu0 %v861_v44  ;;  %v3533_v23 = vld [vmem:[%s3649_s9] sm:$0xff] }
  0xfd   : > { %2508 = vmatprep.subr.bf16.mxu0 %v2711_v32  ;;  %1052 = vmatmul.mubr.bf16.vlgmr.msra.gmra.mrb[0].mxu1 %v853_v47  ;;  %v725_v24 = vrot.slane %v3533_v23, %v724_v22 }
  0xfe   : > { %1059 = vmatprep.mubr.bf16.mxu1 %v869_v48  ;;  %2527 = vmatpush3.bf16.msra.mxu1 %v2737_v59 }
  0xff   : > { %2528 = vmatprep.subr.bf16.mxu1 %v2738_v60 }
 0x100   : > { %2509 = vmatpush3.bf16.msra.mxu0 %v2711_v32 }
 0x101   : > { %2510 = vmatprep.subr.bf16.mxu0 %v2714_v41 }
 0x102   : > { %2529 = vmatpush3.bf16.msra.mxu1 %v2738_v60 }
 0x103   : > { %2530 = vmatprep.subr.bf16.mxu1 %v2739_v61 }
 0x104   : > { %2511 = vmatpush3.bf16.msra.mxu0 %v2714_v41 }
 0x105   : > { %2512 = vmatprep.subr.bf16.mxu0 %v2717_v46  ;;  %1060 = vmatmul.mubr.bf16.gmra.mrb[4].mxu1 %v865_v53 }
 0x106   : > { %2531 = vmatpush3.bf16.msra.mxu1 %v2739_v61 }
 0x107   : > { %2532 = vmatprep.subr.bf16.mxu1 %v2740_v62 }
 0x108   : > { %2513 = vmatpush3.bf16.msra.mxu0 %v2717_v46 }
 0x109   : > { %2514 = vmatprep.subr.bf16.mxu0 %v2720_v49 }
 0x10a   : > { %2533 = vmatpush3.bf16.msra.mxu1 %v2740_v62 }
 0x10b   : > { %2534 = vmatprep.subr.bf16.mxu1 %v2741_v63 }
 0x10c   : > { %2515 = vmatpush3.bf16.msra.mxu0 %v2720_v49 }
 0x10d   : > { %2516 = vmatprep.subr.bf16.mxu0 %v2726_v52 }
 0x10e   : > { %2535 = vmatpush3.bf16.msra.mxu1 %v2741_v63 }
 0x10f   : > { %2536 = vmatprep.subr.bf16.mxu1 %v2742_v0 }
 0x110   : > { %2517 = vmatpush3.bf16.msra.mxu0 %v2726_v52 }
 0x111   : > { %2518 = vmatprep.subr.bf16.mxu0 %v2727_v54 }
 0x112   : > { %2537 = vmatpush3.bf16.msra.mxu1 %v2742_v0 }
 0x113   : > { %2538 = vmatprep.subr.bf16.mxu1 %v2743_v1 }
 0x114   : > { %2519 = vmatpush3.bf16.msra.mxu0 %v2727_v54 }
 0x115   : > { %2520 = vmatprep.subr.bf16.mxu0 %v2732_v55 }
 0x116   : > { %2539 = vmatpush3.bf16.msra.mxu1 %v2743_v1 }
 0x117   : > { %2540 = vmatprep.subr.bf16.mxu1 %v2744_v2 }
 0x118   : > { %2521 = vmatpush3.bf16.msra.mxu0 %v2732_v55 }
 0x11a   : > { %2541 = vmatpush3.bf16.msra.mxu1 %v2744_v2 }
 0x11b   : > { %2523 = vmatmul.mubr.bf16.vlgmr.msra.gmra.mrb[4].mxu0 %v873_v58 }
 0x1ce   : > { %v808_v3 = vpop.f32.mrb[0].mxu0 }
 0x1cf   : > { %v2504_v4 = vpop.f32.mrb[1].mxu0  ;;  %v809_v26 = vadd.f32 %v808_v3, %v725_v24  ;;  %v3543_v24 = vld [vmem:[%s523_s14] sm:$0xff]  ;;  %s3063_s14 = sshll.u32 %s3157_s23, 4  ;;  %s3064_s14 = int_to_ptr.vmem [resolvable:$false] %s3063_s14 }
 0x1d0   : > { %v811_v5 = vpop.f32.mrb[2].mxu0  ;;  %v2400_v7 = vpop.f32.mrb[0].mxu1  ;;  %s3065_s26 = scalar_lea.vmem %s3064_s14, 256  ;;  %p3066_p0 = scmp.lt.s32.totalorder %s3598_s15, %s3064_s14 }
 0x1d1   : > { %v2505_v6 = vpop.f32.mrb[3].mxu0  ;;  %v2401_v8 = vpop.f32.mrb[1].mxu1  ;;  %p3067_p2 = scmp.lt.s32.totalorder %s3065_s26, %s3059_s21 }
 0x1d2   : > { %v2402_v9 = vadd.f32 %v2401_v8, %v2400_v7  ;;  %v2403_v10 = vpop.f32.mrb[2].mxu1 }
 0x1d3   : > { %v2404_v11 = vpop.f32.mrb[3].mxu1  ;;  %p3068_p3 = por %p3067_p2, %p3066_p0 }
 0x1d4   : > { %v2405_v12 = vadd.f32 %v2404_v11, %v2403_v10 }
 0x1d5   : > { %p3069_p4 = pnand %p3068_p3, %p3062_p13 }
 0x1d8   : > { %v2406_v13 = vpop.f32.mrb[4].mxu1 }
 0x1d9   : > { %v2407_v14 = vpop.f32.mrb[5].mxu1 }
 0x1da   : > { %v2408_v16 = vadd.f32 %v2407_v14, %v2406_v13  ;;  %v2409_v17 = vpop.f32.mrb[6].mxu1  ;;  %v2746_v13 = vld [vmem:[#allocation10 + $0x8] sm:$0xff]   ;;  %v2747_v14 = vld [vmem:[#allocation10 + $0x10] sm:$0xff]  }
 0x1db   : > { %v2410_v18 = vpop.f32.mrb[7].mxu1 }
 0x1dc   : > { %v2411_v19 = vadd.f32 %v2410_v18, %v2409_v17  ;;  %v2750_v17 = vld [vmem:[#allocation10 + $0x28] sm:$0xff]   ;;  %v2751_v18 = vld [vmem:[#allocation10 + $0x30] sm:$0xff]  }
 0x1ee   : > { %v2524_v25 = vpop.f32.mrb[4].mxu0 }
 0x1ef   : > { %v1111_v27 = vadd.f32 %v2524_v25, %v2408_v16  ;;  %v1102_v28 = vpop.f32.mrb[5].mxu0  ;;  %v2749_v16 = vld [vmem:[#allocation10 + $0x20] sm:$0xff]   ;;  %v1421_v25 = vsel %vm1420_vm2, %v3543_v24, 0.0 }
 0x1f0   : > { %v1103_v29 = vadd.f32 %v2402_v9, %v1102_v28  ;;  %v2525_v30 = vpop.f32.mrb[6].mxu0  ;;  %1422 = vadd.xlane.f32.xlu0 %v1421_v25  ;;  %v3154_v28 = vmov 2   ;;  %v1426_v25 = vsub.s32 2, %v3527_v21 }
 0x1f1   : > { %v1119_v31 = vadd.f32 %v1111_v27, %v809_v26  ;;  %v1114_v32 = vadd.f32 %v2525_v30, %v2411_v19  ;;  %v1105_v33 = vpop.f32.mrb[7].mxu0  ;;  %v2752_v19 = vld [vmem:[#allocation10 + $0x38] sm:$0xff]   ;;  %v3153_v27 = vmov 0   ;;  %v1161_v30 = vsub.s32 1, %v3527_v21 }
 0x1f2   : > { %v1117_v34 = vadd.f32 %v1103_v29, %v809_v26  ;;  %v1106_v35 = vadd.f32 %v2405_v12, %v1105_v33  ;;  %v2745_v12 = vld [vmem:[#allocation10] sm:$0xff]   ;;  %2687 = vset.pattern.permute.xlu0 %v3153_v27  ;;  %v3155_v29 = vmov 3  }
 0x1f3   : > { %v1127_v36 = vmul.f32 0.044715, %v1119_v31  ;;  %v1120_v37 = vadd.f32 %v1114_v32, %v809_v26  ;;  %v1123_v0 = vmul.f32 0.5, %v1119_v31  ;;  %2546 = vmatprep.subr.bf16.mxu0 %v2745_v12 }
 0x1f4   : > { %v1125_v38 = vmul.f32 0.044715, %v1117_v34  ;;  %v1118_v39 = vadd.f32 %v1106_v35, %v809_v26  ;;  %v1121_v3 = vmul.f32 0.5, %v1117_v34  ;;  %2547 = vmatpush3.bf16.msra.mxu0 %v2745_v12  ;;  %v3152_v26 = vmov 1  }
 0x1f5   : > { %v1131_v40 = vmul.f32 %v1127_v36, %v1119_v31  ;;  %v1128_v41 = vmul.f32 0.044715, %v1120_v37  ;;  %v1124_v1 = vmul.f32 0.5, %v1120_v37  ;;  %2548 = vmatprep.subr.bf16.mxu0 %v2746_v13  ;;  %2688 = vset.pattern.permute.xlu1 %v3152_v26 }
 0x1f6   : > { %v1129_v42 = vmul.f32 %v1125_v38, %v1117_v34  ;;  %v1126_v43 = vmul.f32 0.044715, %v1118_v39  ;;  %v1122_v4 = vmul.f32 0.5, %v1118_v39  ;;  %1403 = vperm.xlu1 %2688, %v3543_v24  }
 0x1f7   : > { %v1135_v44 = vmul.f32 %v1131_v40, %v1119_v31  ;;  %v1132_v45 = vmul.f32 %v1128_v41, %v1120_v37 }
 0x1f8   : > { %v1130_v46 = vmul.f32 %v1126_v43, %v1118_v39  ;;  %v1133_v47 = vmul.f32 %v1129_v42, %v1117_v34  ;;  %2549 = vmatpush3.bf16.msra.mxu0 %v2746_v13 }
 0x1f9   : > { %v1139_v48 = vadd.f32 %v1135_v44, %v1119_v31  ;;  %v1136_v49 = vmul.f32 %v1132_v45, %v1120_v37  ;;  %2550 = vmatprep.subr.bf16.mxu0 %v2747_v14  ;;  %v1162_v31 = vrot.slane %v3533_v23, %v1161_v30 }
 0x1fa   : > { %v1134_v50 = vmul.f32 %v1130_v46, %v1118_v39  ;;  %v1137_v51 = vadd.f32 %v1133_v47, %v1117_v34  ;;  %2689 = vset.pattern.permute.xlu1 %v3154_v28 }
 0x1fb   : > { %v1143_v52 = vmul.f32 0.7978846, %v1139_v48  ;;  %v1140_v53 = vadd.f32 %v1136_v49, %v1120_v37  ;;  %1409 = vperm.xlu1 %2689, %v3543_v24  }
 0x1fc   : > { %v1138_v54 = vadd.f32 %v1134_v50, %v1118_v39  ;;  %v1141_v55 = vmul.f32 0.7978846, %v1137_v51  ;;  %2551 = vmatpush3.bf16.msra.mxu0 %v2747_v14 }
 0x1fd   : > { %2833 = vtanh.f32 %v1143_v52  ;;  %v1144_v56 = vmul.f32 0.7978846, %v1140_v53  ;;  %2552 = vmatprep.subr.bf16.mxu0 %v2748_v15 }
 0x1fe   : > { %v1142_v57 = vmul.f32 0.7978846, %v1138_v54  ;;  %2835 = vtanh.f32 %v1141_v55 }
 0x1ff   : > { %2837 = vtanh.f32 %v1144_v56  ;;  %2690 = vset.pattern.permute.xlu1 %v3155_v29 }
 0x200   : > { %2839 = vtanh.f32 %v1142_v57  ;;  %2553 = vmatpush3.bf16.msra.mxu0 %v2748_v15  ;;  %1415 = vperm.xlu1 %2690, %v3543_v24  }
 0x201   : > { %2554 = vmatprep.subr.bf16.mxu0 %v2749_v16 }
 0x204   : > { %2555 = vmatpush3.bf16.msra.mxu0 %v2749_v16 }
 0x205   : > { %2556 = vmatprep.subr.bf16.mxu0 %v2750_v17 }
 0x206   : > { %1397 = vperm.xlu0 %2687, %v3543_v24  }
 0x207   : > { %v2834_v58 = vpop.eup %2833 }
 0x208   : > { %v2836_v59 = vpop.eup %2835  ;;  %v1151_v60 = vadd.f32 1.0, %v2834_v58  ;;  %2557 = vmatpush3.bf16.msra.mxu0 %v2750_v17 }
 0x209   : > { %v2838_v61 = vpop.eup %2837  ;;  %v1149_v62 = vadd.f32 1.0, %v2836_v59  ;;  %2558 = vmatprep.subr.bf16.mxu0 %v2751_v18 }
 0x20a   : > { %v2840_v63 = vpop.eup %2839  ;;  %v1152_v2 = vadd.f32 1.0, %v2838_v61  ;;  %v1155_v6 = vmul.f32 %v1151_v60, %v1123_v0 }
 0x20b   : > { %v1150_v5 = vadd.f32 1.0, %v2840_v63  ;;  %v1153_v8 = vmul.f32 %v1149_v62, %v1121_v3 }
 0x20c   : > { %v1156_v7 = vmul.f32 %v1152_v2, %v1124_v1  ;;  %2559 = vmatpush3.bf16.msra.mxu0 %v2751_v18 }
 0x20d   : > { %v1154_v9 = vmul.f32 %v1150_v5, %v1122_v4  ;;  %2560 = vmatprep.subr.bf16.mxu0 %v2752_v19 }
 0x20e   : > { %v1158_v10 = vpack.c.bf16 %v1156_v7, %v1155_v6 }
 0x20f   : > { %v1157_v11 = vpack.c.bf16 %v1154_v9, %v1153_v8 }
 0x210   : > { %2561 = vmatpush3.bf16.msra.mxu0 %v2752_v19 }
 0x211   : > { %2542 = vmatprep.mubr.bf16.mxu1 %v1157_v11 }
 0x212   : > { %2543 = vmatmul.mubr.bf16.vlgmr.msra.gmra.mrb[8].mxu1 %v1158_v10 }
 0x213   : > { %1668 = vmatprep.mubr.bf16.mxu1 %v3153_v27 }
 0x275   : > { %v1404_v14 = vpop.permute.xlu1 %1403 }
 0x27a   : > { %v1410_v16 = vpop.permute.xlu1 %1409 }
 0x27d   : > { %v1423_v15 = vpop.xlane.xlu0 %1422 }
 0x285   : > { %v1398_v18 = vpop.permute.xlu0 %1397 }
 0x2e5   : > { %v2544_v32 = vpop.f32.mrb[8].mxu1 }
 0x2e6   : > { %v1254_v33 = vadd.f32 %v2544_v32, %v1162_v31  ;;  %v1245_v34 = vpop.f32.mrb[9].mxu1  ;;  %v1416_v32 = vpop.permute.xlu1 %1415 }
 0x2e7   : > { %v1246_v35 = vadd.f32 %v1245_v34, %v1162_v31  ;;  %v2545_v36 = vpop.f32.mrb[10].mxu1 }
 0x2e8   : > { %v1266_v37 = vmul.f32 0.044715, %v1254_v33  ;;  %v1257_v38 = vadd.f32 %v2545_v36, %v1162_v31  ;;  %v1248_v39 = vpop.f32.mrb[11].mxu1  ;;  %v1262_v2 = vmul.f32 0.5, %v1254_v33 }
 0x2e9   : > { %v1264_v40 = vmul.f32 0.044715, %v1246_v35  ;;  %v1249_v41 = vadd.f32 %v1248_v39, %v1162_v31  ;;  %v1260_v5 = vmul.f32 0.5, %v1246_v35 }
 0x2ea   : > { %v1270_v42 = vmul.f32 %v1266_v37, %v1254_v33  ;;  %v1267_v43 = vmul.f32 0.044715, %v1257_v38  ;;  %v1263_v3 = vmul.f32 0.5, %v1257_v38 }
 0x2eb   : > { %v1268_v44 = vmul.f32 %v1264_v40, %v1246_v35  ;;  %v1265_v45 = vmul.f32 0.044715, %v1249_v41  ;;  %v1261_v6 = vmul.f32 0.5, %v1249_v41 }
 0x2ec   : > { %v1274_v46 = vmul.f32 %v1270_v42, %v1254_v33  ;;  %v1271_v47 = vmul.f32 %v1267_v43, %v1257_v38  ;;  %v2753_v42 = vld [vmem:[#allocation11] ss:$16 sps:$4 sm:$0xff]   ;;  %v2755_v43 = vld [vmem:[#allocation11 + $0x4] ss:$16 sps:$4 sm:$0xff]  }
 0x2ed   : > { %v1272_v48 = vmul.f32 %v1268_v44, %v1246_v35  ;;  %v1269_v49 = vmul.f32 %v1265_v45, %v1249_v41  ;;  %v2756_v44 = vld [vmem:[#allocation11 + $0x8] ss:$16 sps:$4 sm:$0xff]   ;;  %v2758_v45 = vld [vmem:[#allocation11 + $0xc] ss:$16 sps:$4 sm:$0xff]   ;;  %1636 = vmatprep.subr.bf16.mxu1 %v2755_v43  ;;  %v2812_v43 = vld [vmem:[#allocation13 + $0x90] sm:$0xff]  }
 0x2ee   : > { %v1278_v50 = vadd.f32 %v1274_v46, %v1254_v33  ;;  %v1275_v51 = vmul.f32 %v1271_v47, %v1257_v38  ;;  %v1427_v33 = vrot.slane %v3533_v23, %v1426_v25  ;;  %v2761_v46 = vld [vmem:[#allocation11 + $0x24] ss:$16 sps:$4 sm:$0xff]   ;;  %v2764_v47 = vld [vmem:[#allocation11 + $0x2c] ss:$16 sps:$4 sm:$0xff]   ;;  %1677 = vmatprep.subr.bf16.mxu0 %v2758_v45  ;;  %1637 = vmatpush1.bf16.msra.mxu1 %v2753_v42 }
 0x2ef   : > { %v1273_v52 = vmul.f32 %v1269_v49, %v1249_v41  ;;  %v1276_v53 = vadd.f32 %v1272_v48, %v1246_v35  ;;  %v2759_v48 = vld [vmem:[#allocation11 + $0x20] ss:$16 sps:$4 sm:$0xff]   ;;  %1638 = vmatprep.subr.bf16.mxu1 %v2761_v46  ;;  %v2762_v49 = vld [vmem:[#allocation11 + $0x28] ss:$16 sps:$4 sm:$0xff]  }
 0x2f0   : > { %v1282_v54 = vmul.f32 0.7978846, %v1278_v50  ;;  %v1279_v55 = vadd.f32 %v1275_v51, %v1257_v38  ;;  %v1428_v37 = vmul.f32 %v1427_v33, %v1423_v15  ;;  %v2767_v50 = vld [vmem:[#allocation11 + $0x44] ss:$16 sps:$4 sm:$0xff]   ;;  %v2770_v51 = vld [vmem:[#allocation11 + $0x4c] ss:$16 sps:$4 sm:$0xff]  }
 0x2f1   : > { %v1277_v56 = vadd.f32 %v1273_v52, %v1249_v41  ;;  %v1280_v57 = vmul.f32 0.7978846, %v1276_v53  ;;  %v2765_v52 = vld [vmem:[#allocation11 + $0x40] ss:$16 sps:$4 sm:$0xff]   ;;  %v2814_v45 = vld [vmem:[#allocation13 + $0xd8] sm:$0xff]  }
 0x2f2   : > { %2841 = vtanh.f32 %v1282_v54  ;;  %v1283_v58 = vmul.f32 0.7978846, %v1279_v55  ;;  %1639 = vmatpush1.bf16.msra.mxu1 %v2759_v48  ;;  %v2801_v33 = vld [vmem:[#allocation13 + $0x40] sm:$0xff]   ;;  %v2811_v42 = vld [vmem:[#allocation13 + $0x10] sm:$0xff]   ;;  %v2815_v46 = vld [vmem:[#allocation13 + $0x18] sm:$0xff]  }
 0x2f3   : > { %v1281_v59 = vmul.f32 0.7978846, %v1277_v56  ;;  %2843 = vtanh.f32 %v1280_v57  ;;  %1640 = vmatprep.subr.bf16.mxu1 %v2767_v50  ;;  %v2773_v57 = vld [vmem:[#allocation11 + $0x64] ss:$16 sps:$4 sm:$0xff]  }
 0x2f4   : > { %2845 = vtanh.f32 %v1283_v58  ;;  %v2776_v58 = vld [vmem:[#allocation11 + $0x6c] ss:$16 sps:$4 sm:$0xff]   ;;  %v2817_v48 = vld [vmem:[#allocation13 + $0x60] sm:$0xff]  }
 0x2f5   : > { %2847 = vtanh.f32 %v1281_v59  ;;  %v2771_v59 = vld [vmem:[#allocation11 + $0x60] ss:$16 sps:$4 sm:$0xff]  }
 0x2f6   : > { %1641 = vmatpush1.bf16.msra.mxu1 %v2765_v52  ;;  %v2819_v50 = vld [vmem:[#allocation13 + $0x20] sm:$0xff]   ;;  %v2821_v52 = vld [vmem:[#allocation13 + $0x68] sm:$0xff]  }
 0x2f7   : > { %1642 = vmatprep.subr.bf16.mxu1 %v2773_v57  ;;  %v2827_v57 = vld [vmem:[#allocation13 + $0x30] sm:$0xff]  }
 0x2fa   : > { %1643 = vmatpush1.bf16.msra.mxu1 %v2771_v59  ;;  %v2829_v59 = vld [vmem:[#allocation13 + $0x78] sm:$0xff]  }
 0x2fc   : > { %v2842_v60 = vpop.eup %2841 }
 0x2fd   : > { %v2844_v61 = vpop.eup %2843  ;;  %v1290_v62 = vadd.f32 1.0, %v2842_v60  ;;  %v2774_v60 = vld [vmem:[#allocation11 + $0x68] ss:$16 sps:$4 sm:$0xff]  }
 0x2fe   : > { %v2846_v63 = vpop.eup %2845  ;;  %v1288_v0 = vadd.f32 1.0, %v2844_v61  ;;  %v2779_v61 = vld [vmem:[#allocation11 + $0x84] ss:$16 sps:$4 sm:$0xff]  }
 0x2ff   : > { %v2848_v1 = vpop.eup %2847  ;;  %v1291_v4 = vadd.f32 1.0, %v2846_v63  ;;  %v1294_v8 = vmul.f32 %v1290_v62, %v1262_v2  ;;  %v2782_v62 = vld [vmem:[#allocation11 + $0x8c] ss:$16 sps:$4 sm:$0xff]   ;;  %v2777_v63 = vld [vmem:[#allocation11 + $0x80] ss:$16 sps:$4 sm:$0xff]   ;;  %1644 = vmatprep.subr.bf16.mxu1 %v2779_v61 }
 0x300   : > { %v1289_v7 = vadd.f32 1.0, %v2848_v1  ;;  %v1292_v10 = vmul.f32 %v1288_v0, %v1260_v5  ;;  %v2780_v0 = vld [vmem:[#allocation11 + $0x88] ss:$16 sps:$4 sm:$0xff]   ;;  %1645 = vmatpush1.bf16.msra.mxu1 %v2777_v63  ;;  %v2785_v1 = vld [vmem:[#allocation11 + $0xa4] ss:$16 sps:$4 sm:$0xff]  }
 0x301   : > { %v1295_v9 = vmul.f32 %v1291_v4, %v1263_v3  ;;  %v2788_v2 = vld [vmem:[#allocation11 + $0xac] ss:$16 sps:$4 sm:$0xff]   ;;  %v2783_v3 = vld [vmem:[#allocation11 + $0xa0] ss:$16 sps:$4 sm:$0xff]   ;;  %v2786_v4 = vld [vmem:[#allocation11 + $0xa8] ss:$16 sps:$4 sm:$0xff]   ;;  %1646 = vmatprep.subr.bf16.mxu1 %v2785_v1 }
 0x302   : > { %v1293_v11 = vmul.f32 %v1289_v7, %v1261_v6  ;;  %v2791_v5 = vld [vmem:[#allocation11 + $0xc4] ss:$16 sps:$4 sm:$0xff]   ;;  %v2794_v6 = vld [vmem:[#allocation11 + $0xcc] ss:$16 sps:$4 sm:$0xff]   ;;  %v2789_v7 = vld [vmem:[#allocation11 + $0xc0] ss:$16 sps:$4 sm:$0xff]  }
 0x303   : > { %v1297_v12 = vpack.c.bf16 %v1295_v9, %v1294_v8  ;;  %v2792_v8 = vld [vmem:[#allocation11 + $0xc8] ss:$16 sps:$4 sm:$0xff]   ;;  %v2797_v9 = vld [vmem:[#allocation11 + $0xe4] ss:$16 sps:$4 sm:$0xff]   ;;  %v527_v63 = vld [vmem:[%s3685_s11] sm:$0xf] }
 0x304   : > { %v1296_v13 = vpack.c.bf16 %v1293_v11, %v1292_v10  ;;  %1647 = vmatpush1.bf16.msra.mxu1 %v2783_v3  ;;  %v2795_v10 = vld [vmem:[#allocation11 + $0xe0] ss:$16 sps:$4 sm:$0xff]   ;;  %v2798_v11 = vld [vmem:[#allocation11 + $0xe8] ss:$16 sps:$4 sm:$0xff]   ;;  %v1459_v1 = vrot.slane %v527_v63, %v724_v22  ;;  %v1463_v3 = vrot.slane %v527_v63, %v1161_v30 }
 0x305   : > { %1648 = vmatprep.subr.bf16.mxu1 %v2791_v5  ;;  %v2831_v61 = vld [vmem:[#allocation13 + $0x38] sm:$0xff]  }
 0x306   : > { %2562 = vmatprep.mubr.bf16.mxu0 %v1296_v13 }
 0x307   : > { %2563 = vmatmul.mubr.bf16.vlgmr.msra.gmra.mrb[8].mxu0 %v1297_v12  ;;  %v2800_v12 = vld [vmem:[#allocation11 + $0xec] ss:$16 sps:$4 sm:$0xff]  }
 0x308   : > { %1709 = vmatprep.mubr.bf16.mxu0 %v3153_v27  ;;  %1678 = vmatpush1.bf16.msra.mxu0 %v2756_v44  ;;  %v2813_v44 = vld [vmem:[#allocation13 + $0x58] sm:$0xff]  }
 0x309   : > { %1679 = vmatprep.subr.bf16.mxu0 %v2764_v47  ;;  %1649 = vmatpush1.bf16.msra.mxu1 %v2789_v7  ;;  %v2816_v47 = vld [vmem:[#allocation13 + $0x98] sm:$0xff]  }
 0x30a   : > { %1650 = vmatprep.subr.bf16.mxu1 %v2797_v9 }
 0x30c   : > { %1680 = vmatpush1.bf16.msra.mxu0 %v2762_v49  ;;  %v2818_v49 = vld [vmem:[#allocation13 + $0xe0] sm:$0xff]  }
 0x30d   : > { %1681 = vmatprep.subr.bf16.mxu0 %v2770_v51  ;;  %1651 = vmatpush1.bf16.msra.mxu1 %v2795_v10  ;;  %v2820_v51 = vld [vmem:[#allocation13 + $0xa0] sm:$0xff]  }
 0x30e   : > { %2442 = vmatprep.subr.bf16.mxu1 %v2801_v33 }
 0x3da   : > { %v2564_v17 = vpop.f32.mrb[8].mxu0 }
 0x3db   : > { %v1380_v19 = vpop.f32.mrb[9].mxu0  ;;  %v1412_v34 = vmul.f32 %v2564_v17, %v1410_v16  ;;  %v1446_v16 = vsub.s32 4, %v3527_v21  ;;  %v1451_v17 = vsub.s32 5, %v3527_v21 }
 0x3dc   : > { %v2565_v26 = vpop.f32.mrb[10].mxu0  ;;  %v1400_v29 = vmul.f32 %v1398_v18, %v1380_v19 }
 0x3dd   : > { %v1383_v28 = vpop.f32.mrb[11].mxu0  ;;  %v1418_v27 = vmul.f32 %v2565_v26, %v1416_v32  ;;  %v1447_v18 = vrot.slane %v3533_v23, %v1446_v16 }
 0x3de   : > { %v1406_v31 = vmul.f32 %v1404_v14, %v1383_v28  ;;  %v1452_v28 = vrot.slane %v3533_v23, %v1451_v17 }
 0x3e0   : > { %v1407_v35 = vadd.f32 %v1406_v31, %v1400_v29 }
 0x3e2   : > { %v1413_v36 = vadd.f32 %v1412_v34, %v1407_v35  ;;  %v2802_v34 = vld [vmem:[#allocation13 + $0xc0] sm:$0xff]  }
 0x3e3   : > { %v2803_v35 = vld [vmem:[#allocation13] sm:$0xff]  }
 0x3e4   : > { %v1419_v38 = vadd.f32 %v1418_v27, %v1413_v36  ;;  %v2804_v27 = vld [vmem:[#allocation13 + $0x80] sm:$0xff]   ;;  %v2805_v36 = vld [vmem:[#allocation13 + $0x48] sm:$0xff]  }
 0x3e6   : > { %v1429_v39 = vadd.f32 %v1428_v37, %v1419_v38  ;;  %v2806_v37 = vld [vmem:[#allocation13 + $0xc8] sm:$0xff]  }
 0x3e7   : > { %v2807_v38 = vld [vmem:[#allocation13 + $0x8] sm:$0xff]  }
 0x3e8   : > { %v1430_v40 = vmul.f32 0.033333335, %v1429_v39  ;;  %v2808_v39 = vld [vmem:[#allocation13 + $0x88] sm:$0xff]  }
 0x3ea   : > { %v1431_v41 = vadd.f32 %v1430_v40, %v3511_v20  ;;  %v2768_v20 = vld [vmem:[#allocation11 + $0x48] ss:$16 sps:$4 sm:$0xff]   ;;  %v2809_v40 = vld [vmem:[#allocation13 + $0x50] sm:$0xff]  }
 0x3eb   : > { %1682 = vmatpush1.bf16.msra.mxu0 %v2768_v20  ;;  %v2822_v20 = vld [vmem:[#allocation13 + $0xe8] sm:$0xff]  }
 0x3ec   : > { %1432 = vadd.xlane.f32.xlu1 %v1431_v41  ;;  %1683 = vmatprep.subr.bf16.mxu0 %v2776_v58  ;;  %v2828_v58 = vld [vmem:[#allocation13 + $0xb0] sm:$0xff]  }
 0x3ef   : > { %1684 = vmatpush1.bf16.msra.mxu0 %v2774_v60  ;;  %v2830_v60 = vld [vmem:[#allocation13 + $0xf8] sm:$0xff]  }
 0x3f0   : > { %1685 = vmatprep.subr.bf16.mxu0 %v2782_v62  ;;  %v2832_v62 = vld [vmem:[#allocation13 + $0xb8] sm:$0xff]  }
 0x3f3   : > { %1686 = vmatpush1.bf16.msra.mxu0 %v2780_v0  ;;  %v1470_v0 = vsub.s32 3, %v3527_v21 }
 0x3f4   : > { %1687 = vmatprep.subr.bf16.mxu0 %v2788_v2  ;;  %v1467_v2 = vrot.slane %v527_v63, %v1426_v25 }
 0x3f7   : > { %1688 = vmatpush1.bf16.msra.mxu0 %v2786_v4  ;;  %v1471_v4 = vrot.slane %v527_v63, %v1470_v0 }
 0x3f8   : > { %1689 = vmatprep.subr.bf16.mxu0 %v2794_v6 }
 0x3fb   : > { %1690 = vmatpush1.bf16.msra.mxu0 %v2792_v8 }
 0x3fc   : > { %1691 = vmatprep.subr.bf16.mxu0 %v2800_v12 }
 0x3ff   : > { %1692 = vmatpush1.bf16.msra.mxu0 %v2798_v11 }
 0x400   : > { %2464 = vmatprep.subr.bf16.mxu0 %v2802_v34 }
 0x479   : > { %v1433_v53 = vpop.xlane.xlu1 %1432 }
 0x47a   : > { %v1435_v54 = vmul.f32 0.0078125, %v1433_v53  ;;  %v2823_v53 = vld [vmem:[#allocation13 + $0x28] sm:$0xff]  }
 0x47c   : > { %v1436_v55 = vsub.f32 %v1431_v41, %v1435_v54  ;;  %v2810_v41 = vld [vmem:[#allocation13 + $0xd0] sm:$0xff]   ;;  %v2824_v54 = vld [vmem:[#allocation13 + $0xa8] sm:$0xff]  }
 0x47e   : > { %v1437_v56 = vmul.f32 %v1436_v55, %v1436_v55 }
 0x480   : > { %1438 = vadd.xlane.f32.xlu0 %v1437_v56  ;;  %v2826_v56 = vld [vmem:[#allocation13 + $0xf0] sm:$0xff]  }
 0x50d   : > { %v1439_v13 = vpop.xlane.xlu0 %1438 }
 0x50e   : > { %v1440_v14 = vmul.f32 0.0078125, %v1439_v13 }
 0x510   : > { %v1441_v15 = vadd.f32 1e-05, %v1440_v14 }
 0x512   : > { %2849 = vrsqrt.f32 %v1441_v15 }
 0x51c   : > { %v2850_v19 = vpop.eup %2849 }
 0x51d   : > { %v1443_v26 = vmul.f32 %v2850_v19, %v1436_v55  ;;  %v2825_v55 = vld [vmem:[#allocation13 + $0x70] sm:$0xff]  }
 0x51f   : > { %v1448_v29 = vmul.f32 %v1447_v18, %v1443_v26 }
 0x521   : > { %v3566_v31 = vadd.f32 %v1452_v28, %v1448_v29 }
 0x523   : > { %v1454_v32 = vpack.c.bf16 %v3566_v31, %v3566_v31 }
 0x525   : > { %1669 = vmatmul.mubr.bf16.vlgmr.msra.gmra.mrb[12].mxu1 %v1454_v32  ;;  %1710 = vmatmul.mubr.bf16.vlgmr.msra.gmra.mrb[12].mxu0 %v1454_v32 }
 0x526   : > { %2443 = vmatpush3.bf16.msra.mxu1 %v2803_v35  ;;  %2465 = vmatpush3.bf16.msra.mxu0 %v2804_v27 }
 0x527   : > { %2444 = vmatprep.subr.bf16.mxu1 %v2805_v36  ;;  %2466 = vmatprep.subr.bf16.mxu0 %v2806_v37 }
 0x52a   : > { %2445 = vmatpush3.bf16.msra.mxu1 %v2807_v38  ;;  %2467 = vmatpush3.bf16.msra.mxu0 %v2808_v39 }
 0x52b   : > { %2446 = vmatprep.subr.bf16.mxu1 %v2809_v40  ;;  %2468 = vmatprep.subr.bf16.mxu0 %v2810_v41 }
 0x52e   : > { %2447 = vmatpush3.bf16.msra.mxu1 %v2811_v42  ;;  %2469 = vmatpush3.bf16.msra.mxu0 %v2812_v43 }
 0x52f   : > { %2448 = vmatprep.subr.bf16.mxu1 %v2813_v44  ;;  %2470 = vmatprep.subr.bf16.mxu0 %v2814_v45 }
 0x532   : > { %2449 = vmatpush3.bf16.msra.mxu1 %v2815_v46  ;;  %2471 = vmatpush3.bf16.msra.mxu0 %v2816_v47 }
 0x533   : > { %2450 = vmatprep.subr.bf16.mxu1 %v2817_v48  ;;  %2472 = vmatprep.subr.bf16.mxu0 %v2818_v49 }
 0x536   : > { %2451 = vmatpush3.bf16.msra.mxu1 %v2819_v50  ;;  %2473 = vmatpush3.bf16.msra.mxu0 %v2820_v51 }
 0x537   : > { %2452 = vmatprep.subr.bf16.mxu1 %v2821_v52  ;;  %2474 = vmatprep.subr.bf16.mxu0 %v2822_v20 }
 0x53a   : > { %2453 = vmatpush3.bf16.msra.mxu1 %v2823_v53  ;;  %2475 = vmatpush3.bf16.msra.mxu0 %v2824_v54 }
 0x53b   : > { %2454 = vmatprep.subr.bf16.mxu1 %v2825_v55  ;;  %2476 = vmatprep.subr.bf16.mxu0 %v2826_v56 }
 0x53e   : > { %2455 = vmatpush3.bf16.msra.mxu1 %v2827_v57  ;;  %2477 = vmatpush3.bf16.msra.mxu0 %v2828_v58 }
 0x53f   : > { %2456 = vmatprep.subr.bf16.mxu1 %v2829_v59  ;;  %2478 = vmatprep.subr.bf16.mxu0 %v2830_v60 }
 0x542   : > { %2457 = vmatpush3.bf16.msra.mxu1 %v2831_v61  ;;  %2479 = vmatpush3.bf16.msra.mxu0 %v2832_v62  ;;  %v1761_v62 = vrot.slane %v3533_v23, %v1470_v0 }
 0x5f8   : > { %v1670_v5 = vpop.f32.mrb[12].mxu1  ;;  %v1711_v6 = vpop.f32.mrb[12].mxu0 }
 0x5f9   : > { %v1671_v7 = vadd.f32 %v1670_v5, %v1459_v1  ;;  %v1712_v8 = vadd.f32 %v1711_v6, %v1467_v2  ;;  %v1672_v9 = vpop.f32.mrb[13].mxu1  ;;  %v1713_v10 = vpop.f32.mrb[13].mxu0 }
 0x5fa   : > { %v1673_v11 = vadd.f32 %v1672_v9, %v1463_v3  ;;  %v1714_v12 = vadd.f32 %v1713_v10, %v1471_v4  ;;  %v1674_v13 = vpop.f32.mrb[14].mxu1  ;;  %v1715_v14 = vpop.f32.mrb[14].mxu0 }
 0x5fb   : > { %v1722_v22 = vmul.f32 0.044715, %v1671_v7  ;;  %v1724_v15 = vmul.f32 0.044715, %v1712_v8  ;;  %v1675_v16 = vpop.f32.mrb[15].mxu1  ;;  %v1716_v25 = vpop.f32.mrb[15].mxu0 }
 0x5fc   : > { %v1723_v17 = vmul.f32 0.044715, %v1673_v11  ;;  %v1725_v18 = vmul.f32 0.044715, %v1714_v12  ;;  %v1718_v44 = vmul.f32 0.5, %v1671_v7  ;;  %v1719_v47 = vmul.f32 0.5, %v1673_v11 }
 0x5fd   : > { %v1726_v30 = vmul.f32 %v1722_v22, %v1671_v7  ;;  %v1728_v19 = vmul.f32 %v1724_v15, %v1712_v8  ;;  %v1721_v50 = vmul.f32 0.5, %v1714_v12  ;;  %v1720_v53 = vmul.f32 0.5, %v1712_v8 }
 0x5fe   : > { %v1727_v26 = vmul.f32 %v1723_v17, %v1673_v11  ;;  %v1729_v28 = vmul.f32 %v1725_v18, %v1714_v12  ;;  %v2048_v17 = vsub.s32 6, %v3527_v21 }
 0x5ff   : > { %v1730_v29 = vmul.f32 %v1726_v30, %v1671_v7  ;;  %v1732_v32 = vmul.f32 %v1728_v19, %v1712_v8 }
 0x600   : > { %v1731_v33 = vmul.f32 %v1727_v26, %v1673_v11  ;;  %v1733_v34 = vmul.f32 %v1729_v28, %v1714_v12  ;;  %v2049_v18 = vrot.slane %v3533_v23, %v2048_v17 }
 0x601   : > { %v1734_v35 = vadd.f32 %v1730_v29, %v1671_v7  ;;  %v1736_v27 = vadd.f32 %v1732_v32, %v1712_v8 }
 0x602   : > { %v1735_v36 = vadd.f32 %v1731_v33, %v1673_v11  ;;  %v1737_v37 = vadd.f32 %v1733_v34, %v1714_v12  ;;  %v3156_v12 = vmov 4  }
 0x603   : > { %v1738_v38 = vmul.f32 0.7978846, %v1734_v35  ;;  %v1740_v41 = vmul.f32 0.7978846, %v1736_v27  ;;  %2691 = vset.pattern.permute.xlu1 %v3156_v12  ;;  %2692 = vset.pattern.permute.xlu0 %v3156_v12 }
 0x604   : > { %v1739_v39 = vmul.f32 0.7978846, %v1735_v36  ;;  %v1741_v40 = vmul.f32 0.7978846, %v1737_v37 }
 0x605   : > { %2851 = vtanh.f32 %v1738_v38 }
 0x606   : > { %2853 = vtanh.f32 %v1739_v39 }
 0x607   : > { %2855 = vtanh.f32 %v1741_v40 }
 0x608   : > { %2857 = vtanh.f32 %v1740_v41 }
 0x60f   : > { %v2852_v42 = vpop.eup %2851 }
 0x610   : > { %v2854_v43 = vpop.eup %2853  ;;  %v1746_v45 = vadd.f32 1.0, %v2852_v42 }
 0x611   : > { %v2856_v46 = vpop.eup %2855  ;;  %v1747_v48 = vadd.f32 1.0, %v2854_v43 }
 0x612   : > { %v2858_v49 = vpop.eup %2857  ;;  %v1749_v51 = vadd.f32 1.0, %v2856_v46  ;;  %v1750_v52 = vmul.f32 %v1746_v45, %v1718_v44 }
 0x613   : > { %v1751_v20 = vmul.f32 %v1747_v48, %v1719_v47  ;;  %v1748_v54 = vadd.f32 1.0, %v2858_v49 }
 0x614   : > { %v1753_v55 = vmul.f32 %v1749_v51, %v1721_v50  ;;  %v1754_v59 = vpack.c.bf16 %v1750_v52, %v1750_v52 }
 0x615   : > { %v1755_v56 = vpack.c.bf16 %v1751_v20, %v1751_v20  ;;  %v1752_v57 = vmul.f32 %v1748_v54, %v1720_v53 }
 0x616   : > { %v1757_v58 = vpack.c.bf16 %v1753_v55, %v1753_v55 }
 0x617   : > { %1986 = vmatprep.mubr.bf16.mxu1 %v1755_v56  ;;  %v1756_v60 = vpack.c.bf16 %v1752_v57, %v1752_v57 }
 0x618   : > { %2026 = vmatprep.mubr.bf16.mxu0 %v1757_v58  ;;  %1987 = vmatmul.mubr.bf16.vlgmr.msra.gmra.mrb[16].mxu1 %v1754_v59 }
 0x619   : > { %2027 = vmatmul.mubr.bf16.vlgmr.msra.gmra.mrb[16].mxu0 %v1756_v60 }
 0x6eb   : > { %v2458_v61 = vpop.f32.mrb[16].mxu1 }
 0x6ec   : > { %v2480_v63 = vpop.f32.mrb[16].mxu0  ;;  %v2459_v1 = vpop.f32.mrb[17].mxu1 }
 0x6ed   : > { %v2460_v2 = vadd.f32 %v2459_v1, %v2458_v61  ;;  %v2481_v3 = vpop.f32.mrb[17].mxu0  ;;  %v2461_v4 = vpop.f32.mrb[18].mxu1 }
 0x6ee   : > { %v2482_v5 = vadd.f32 %v2481_v3, %v2480_v63  ;;  %v2483_v6 = vpop.f32.mrb[18].mxu0  ;;  %v2462_v7 = vpop.f32.mrb[19].mxu1 }
 0x6ef   : > { %v1989_v8 = vadd.f32 %v2460_v2, %v1761_v62  ;;  %v2484_v9 = vpop.f32.mrb[19].mxu0 }
 0x6f1   : > { %v2029_v10 = vadd.f32 %v2482_v5, %v1989_v8 }
 0x6f3   : > { %v2034_v11 = vadd.f32 %v2029_v10, %v3566_v31  ;;  %v2053_v31 = vsub.s32 7, %v3527_v21 }
 0x6f5   : > { %2035 = vadd.xlane.f32.xlu1 %v2034_v11  ;;  %v2054_v26 = vrot.slane %v3533_v23, %v2053_v31 }
 0x782   : > { %v2036_v13 = vpop.xlane.xlu1 %2035 }
 0x783   : > { %v2037_v0 = vmul.f32 0.0078125, %v2036_v13 }
 0x785   : > { %v2038_v14 = vsub.f32 %v2034_v11, %v2037_v0 }
 0x787   : > { %v2039_v22 = vmul.f32 %v2038_v14, %v2038_v14 }
 0x789   : > { %2040 = vadd.xlane.f32.xlu1 %v2039_v22 }
 0x79a   : > { %2057 = vperm.xlu1 %2691, %v3543_v24  }
 0x816   : > { %v2041_v15 = vpop.xlane.xlu1 %2040 }
 0x817   : > { %v2042_v16 = vmul.f32 0.0078125, %v2041_v15 }
 0x819   : > { %v2043_v25 = vadd.f32 1e-05, %v2042_v16 }
 0x81a   : > { %v2058_v29 = vpop.permute.xlu1 %2057 }
 0x81b   : > { %2859 = vrsqrt.f32 %v2043_v25 }
 0x825   : > { %v2860_v30 = vpop.eup %2859 }
 0x826   : > { %v2045_v19 = vmul.f32 %v2860_v30, %v2038_v14 }
 0x828   : > { %v2050_v28 = vmul.f32 %v2049_v18, %v2045_v19 }
 0x82a   : > { %v2055_v24 = vadd.f32 %v2054_v26, %v2050_v28 }
 0x82c   : > { %v2060_v32 = vmul.f32 %v2058_v29, %v2055_v24 }
 0x82e   : > { %2061 = vst [vmem:[%s515_s10] sm:$0xff] %v2060_v32 }
 0x82f   : > { %3072 = shalt.err (!%p3069_p4)
}
 0x830   : > { %s3073_s27 = scalar_lea.hbm %s3596_s30, 128  ;;  %s3077_s24 = scalar_lea.hbm %s3686_s13, 256 }
 0x831   : > { %p3074_p10 = scmp.ne.s32.totalorder %s3596_s30, %s3073_s27  ;;  %p3078_p6 = scmp.lt.u32.totalorder %s3596_s30, %s3686_s13 }
 0x832   : > { %p3079_p7 = scmp.lt.u32.totalorder %s3077_s24, %s3073_s27  ;;  %p3081_p9 = scmp.lt.u32.totalorder %s3073_s27, %s3596_s30 }
 0x833   : > { %p3075_p11 = pnand %p3074_p10, %p3687_p12 }
 0x834   : > { %p3080_p5 = por %p3079_p7, %p3078_p6 }
 0x835   : > { %p3076_p8 = pneg %p3075_p11 }
 0x836   : > { %p3082_p1 = por %p3081_p9, %p3080_p5 }
 0x838   : > { %p3083_p13 = pnand %p3082_p1, %p3076_p8 }
 0x83a   : > { %3086 = shalt.err (!%p3083_p13)
}
 0x83b   : > { %2595 = dma.vmem_to_hbm [thread:$0]  (%p3687_p12), %s3598_s15, 128, %s3596_s30, %s2063_s22  }
 0x83c PF: > { %s2088_s25 = sand.u32 1, %s3125_s17   ;;  %p3688_p0 = scmp.ne.s32.totalorder %s3675_s3, 0 }
 0x83d   : > { %p3689_p2 = scmp.ge.s32.totalorder %s3137_s20, 2  ;;  %s2089_s28 = scalar_lea.sflag [#allocation4], %s2088_s25 }
 0x83f   : > { %p2621_p3 = pnand %p3689_p2, %p3688_p0 }
 0x841   : > { %3120 = dma.done.wait (!%p2621_p3), %s2089_s28, 128  }
 0x842   : > { %3122 = vsyncadd (!%p2621_p3), %s2089_s28, 4294967168  ;;  %p27_p4 = scmp.ge.s32.totalorder %s3409_s16, 4   ;;  %s3690_s17 = smov %s3129_s18 }
 0x843   : > { %s3691_s18 = smov %s3133_s19  ;;  %s3692_s19 = smov %s3420_s29 }
 0x844   : > { %s3693_s20 = smov %s3409_s16  ;;  %29 = sbr.rel (!%p27_p4) target bundleno = 14 (0xe), region = 139 }
 0x84b   :  { %2094 = vsyncpa [#allocation3], 1 }
 0x84c   :  { %2096 = vsyncpa [#allocation3 + $0x1], 1 }
 0x84d   :  { %2097 = vsyncpa [#allocation6], 1 }
 0x84e   :  { %2098 = vsyncpa [#allocation9], 1 }
 0x84f   :  { %2099 = vsyncpa [#allocation12], 1 }
 0x850   :  { %2100 = vsyncpa [#allocation4], 1 }
 0x851   :  { %2102 = vsyncpa [#allocation4 + $0x1], 1 }

</bundles_post_ra>
